<compile_context>
chip_gen: v6e
topology: v6e:2x2x1
jax: 0.10.0
libtpu: 0.0.40
codegen_flags: <defaults>
</compile_context>

<pallas_src>
import functools

import jax
import jax.numpy as jnp
from jax.experimental import pallas as pl
from jax.experimental.pallas import tpu as pltpu


def _round_up(x, m):
    return ((x + m - 1) // m) * m


def _mha_kernel(q_ref, k_ref, v_ref,
                wq_ref, bq_ref, wk_ref, bk_ref, wv_ref, bv_ref,
                wo_ref, bo_ref,
                out_ref, w_ref,
                *, num_heads, tgt_len, src_len, batch):
    T, S, B, H = tgt_len, src_len, batch, num_heads
    E = q_ref.shape[-1]
    hd = E // H
    s_pad = w_ref.shape[-1]
    f32 = jnp.float32

    # ---- fused input projections over ALL (seq * batch) rows --------------
    # PyTorch Linear: y = x @ W^T + b (W^T is passed in).  The 1/sqrt(hd)
    # query scaling is already folded into wq/bq by the wrapper.
    q = jnp.dot(q_ref[...], wq_ref[...], preferred_element_type=f32) + bq_ref[...]
    k = jnp.dot(k_ref[...], wk_ref[...], preferred_element_type=f32) + bk_ref[...]
    v = jnp.dot(v_ref[...], wv_ref[...], preferred_element_type=f32) + bv_ref[...]

    # Rows are seq-major (row = t * B + b) because the wrapper's reshape of the
    # [L, B, E] inputs was metadata-only.  Recover per-batch views in VMEM.
    q3 = q.reshape(T, B, E)
    k3 = k.reshape(S, B, E)
    v3 = v.reshape(S, B, E)

    # Constant [I_S | 0] selection matrix: pads the (T, S) averaged attention
    # weights to a lane-dense (T, S_pad) slab via one tiny MXU matmul (padded
    # columns are exactly 0).
    rows = jax.lax.broadcasted_iota(jnp.int32, (S, s_pad), 0)
    cols = jax.lax.broadcasted_iota(jnp.int32, (S, s_pad), 1)
    pad_eye = (rows == cols).astype(f32)

    inv_h = 1.0 / H
    ctx_list = []
    for b in range(B):  # B is small & static -> unrolled at trace time
        qh = q3[:, b, :].reshape(T, H, hd)
        kh = k3[:, b, :].reshape(S, H, hd)
        vh = v3[:, b, :].reshape(S, H, hd)

        # Head-batched dot_generals (H is the batch dimension of the einsums).
        scores = jnp.einsum('thd,shd->hts', qh, kh,
                            preferred_element_type=f32)          # (H, T, S)

        # TODO(synk): attn_mask / key_padding_mask not wired in (forward is
        # exercised with both None, matching the reference path here).

        m = jnp.max(scores, axis=-1, keepdims=True)
        p = jnp.exp(scores - m)
        denom = jnp.sum(p, axis=-1, keepdims=True)
        # EUP approximate reciprocal instead of a VALU divide.
        attn = p * pl.reciprocal(denom, approx=True)              # (H, T, S)

        # dropout_p == 0.0 in this configuration -> F.dropout is a no-op.

        ctx = jnp.einsum('hts,shd->thd', attn, vh,
                         preferred_element_type=f32)              # (T, H, hd)
        ctx_list.append(ctx.reshape(T, E))

        # Head-averaged attention weights, stored lane-dense (S_pad columns).
        avg_w = jnp.sum(attn, axis=0) * inv_h                     # (T, S)
        w_ref[b] = jnp.dot(avg_w, pad_eye,
                           preferred_element_type=f32).astype(w_ref.dtype)

    # Re-interleave per-batch contexts back to seq-major rows (t*B + b) and run
    # ONE fused output projection; Wo^T / bo are zero-padded to E_pad columns
    # so the store below is a full-lane (unmasked) store.
    concat = jnp.stack(ctx_list, axis=1).reshape(T * B, E)
    z = jnp.dot(concat, wo_ref[...], preferred_element_type=f32) + bo_ref[...]
    out_ref[...] = z.astype(out_ref.dtype)


def my_multihead_attention(query, key, value, params, num_heads):
    """query: [T, B, E]; key/value: [S, B, E] (PyTorch seq-major layout).
    Returns (attn_output [T, B, E], attn_weights [B, T, S])."""
    T, B, E = query.shape
    S = key.shape[0]
    hd = E // num_heads
    scaling = float(hd) ** (-0.5)
    e_pad = _round_up(E, 128)
    s_pad = _round_up(S, 128)

    # Free (metadata-only) reshapes: no HBM transpose round-trip of activations.
    q2 = query.reshape(T * B, E)
    k2 = key.reshape(S * B, E)
    v2 = value.reshape(S * B, E)

    # PyTorch Linear stores W as [out, in]; pre-transpose.  Fold the query
    # scaling into Wq/bq; zero-pad the output projection to a lane-dense slab.
    wq_t = params['wq'].T * scaling
    bq = (params['bq'] * scaling).reshape(1, E)
    wk_t = params['wk'].T
    bk = params['bk'].reshape(1, E)
    wv_t = params['wv'].T
    bv = params['bv'].reshape(1, E)
    wo_t = jnp.pad(params['wo'].T, ((0, 0), (0, e_pad - E)))
    bo = jnp.pad(params['bo'].reshape(1, E), ((0, 0), (0, e_pad - E)))

    kernel = functools.partial(_mha_kernel, num_heads=num_heads,
                               tgt_len=T, src_len=S, batch=B)

    whole2 = lambda i: (0, 0)
    whole3 = lambda i: (0, 0, 0)

    z_pad, w_pad = pl.pallas_call(
        kernel,
        # Single fused step: at these sizes per-grid-step overhead dominates.
        # For large B*T, re-introduce a "parallel" row-tile grid axis here.
        grid=(1,),
        in_specs=[
            pl.BlockSpec((T * B, E), whole2),      # query rows (seq-major)
            pl.BlockSpec((S * B, E), whole2),      # key rows
            pl.BlockSpec((S * B, E), whole2),      # value rows
            pl.BlockSpec((E, E), whole2),          # Wq^T (pre-scaled)
            pl.BlockSpec((1, E), whole2),          # bq   (pre-scaled)
            pl.BlockSpec((E, E), whole2),          # Wk^T
            pl.BlockSpec((1, E), whole2),          # bk
            pl.BlockSpec((E, E), whole2),          # Wv^T
            pl.BlockSpec((1, E), whole2),          # bv
            pl.BlockSpec((E, e_pad), whole2),      # Wo^T zero-padded to E_pad
            pl.BlockSpec((1, e_pad), whole2),      # bo   zero-padded
        ],
        out_specs=[
            pl.BlockSpec((T * B, e_pad), whole2),  # lane-dense output slab
            pl.BlockSpec((B, T, s_pad), whole3),   # lane-dense weights slab
        ],
        out_shape=[
            jax.ShapeDtypeStruct((T * B, e_pad), jnp.float32),
            jax.ShapeDtypeStruct((B, T, s_pad), jnp.float32),
        ],
        compiler_params=pltpu.CompilerParams(
            dimension_semantics=("arbitrary",)),
    )(q2, k2, v2, wq_t, bq, wk_t, bk, wv_t, bv, wo_t, bo)

    # Slice off the lane padding; rows are already seq-major -> [T, B, E].
    attn_output = z_pad[:, :E].reshape(T, B, E)
    attn_weights = w_pad[:, :, :S]
    return attn_output, attn_weights


def _reference(query, key, value, params, num_heads):
    """Pure-JAX reference mirroring multi_head_attention_forward."""
    T, B, E = query.shape
    S = key.shape[0]
    hd = E // num_heads
    scaling = float(hd) ** (-0.5)

    q = query @ params['wq'].T + params['bq']
    k = key @ params['wk'].T + params['bk']
    v = value @ params['wv'].T + params['bv']
    q = q * scaling

    q = q.reshape(T, B * num_heads, hd).transpose(1, 0, 2)
    k = k.reshape(S, B * num_heads, hd).transpose(1, 0, 2)
    v = v.reshape(S, B * num_heads, hd).transpose(1, 0, 2)

    w = jnp.einsum('btd,bsd->bts', q, k)
    w = jax.nn.softmax(w, axis=-1)
    o = jnp.einsum('bts,bsd->btd', w, v)
    o = o.transpose(1, 0, 2).reshape(T, B, E)
    z = o @ params['wo'].T + params['bo']
    w = w.reshape(B, num_heads, T, S)
    return z, w.sum(axis=1) / num_heads


def _xavier_uniform(key, shape):
    fan_in, fan_out = shape[1], shape[0]
    a = (6.0 / (fan_in + fan_out)) ** 0.5
    return jax.random.uniform(key, shape, jnp.float32, minval=-a, maxval=a)


if __name__ == "__main__":
    # Small shapes consistent with the module's forward.
    T, S, B = 8, 8, 2          # tgt_len, src_len, batch
    E, H = 32, 4               # embed_dim, num_heads

    root = jax.random.PRNGKey(0)
    keys = jax.random.split(root, 12)

    params = {
        'wq': _xavier_uniform(keys[0], (E, E)),
        'wk': _xavier_uniform(keys[1], (E, E)),
        'wv': _xavier_uniform(keys[2], (E, E)),
        'wo': _xavier_uniform(keys[3], (E, E)),
        'bq': 0.01 * jax.random.normal(keys[4], (E,), jnp.float32),
        'bk': 0.01 * jax.random.normal(keys[5], (E,), jnp.float32),
        'bv': 0.01 * jax.random.normal(keys[6], (E,), jnp.float32),
        'bo': 0.01 * jax.random.normal(keys[7], (E,), jnp.float32),
    }

    query = jax.random.normal(keys[8], (T, B, E), jnp.float32)
    key_ = jax.random.normal(keys[9], (S, B, E), jnp.float32)
    value = jax.random.normal(keys[10], (S, B, E), jnp.float32)

    mha = jax.jit(functools.partial(my_multihead_attention, num_heads=H))
    attn_out, attn_w = mha(query, key_, value, params)
    jax.block_until_ready((attn_out, attn_w))

    ref_out, ref_w = _reference(query, key_, value, params, H)
    assert attn_out.shape == (T, B, E)
    assert attn_w.shape == (B, T, S)
    # Tolerance accounts for the approximate EUP reciprocal in the softmax.
    assert jnp.allclose(attn_out, ref_out, atol=5e-3, rtol=5e-3)
    assert jnp.allclose(attn_w, ref_w, atol=5e-3, rtol=5e-3)

    print("KERNEL_OK")
</pallas_src>

<mosaic_0001>
module attributes {stable_mosaic.version = 11 : i64} {
  func.func @_mha_kernel(%arg0: i32, %arg1: memref<16x32xf32, #tpu.memory_space<vmem>>, %arg2: memref<16x32xf32, #tpu.memory_space<vmem>>, %arg3: memref<16x32xf32, #tpu.memory_space<vmem>>, %arg4: memref<32x32xf32, #tpu.memory_space<vmem>>, %arg5: memref<1x32xf32, #tpu.memory_space<vmem>>, %arg6: memref<32x32xf32, #tpu.memory_space<vmem>>, %arg7: memref<1x32xf32, #tpu.memory_space<vmem>>, %arg8: memref<32x32xf32, #tpu.memory_space<vmem>>, %arg9: memref<1x32xf32, #tpu.memory_space<vmem>>, %arg10: memref<32x128xf32, #tpu.memory_space<vmem>>, %arg11: memref<1x128xf32, #tpu.memory_space<vmem>>, %arg12: memref<16x128xf32, #tpu.memory_space<vmem>>, %arg13: memref<2x8x128xf32, #tpu.memory_space<vmem>>) attributes {dimension_semantics = [#tpu.dimension_semantics<arbitrary>], iteration_bounds = array<i64: 1>, scalar_prefetch = 0 : i64, scratch_operands = 0 : i64, tpu.core_type = #tpu.core_type<tc>, window_params = [{pipeline_mode = #tpu.pipeline_mode<synchronous>, transform_indices = @transform_0, window_bounds = array<i64: 16, 32>}, {pipeline_mode = #tpu.pipeline_mode<synchronous>, transform_indices = @transform_1, window_bounds = array<i64: 16, 32>}, {pipeline_mode = #tpu.pipeline_mode<synchronous>, transform_indices = @transform_2, window_bounds = array<i64: 16, 32>}, {pipeline_mode = #tpu.pipeline_mode<synchronous>, transform_indices = @transform_3, window_bounds = array<i64: 32, 32>}, {pipeline_mode = #tpu.pipeline_mode<synchronous>, transform_indices = @transform_4, window_bounds = array<i64: 1, 32>}, {pipeline_mode = #tpu.pipeline_mode<synchronous>, transform_indices = @transform_5, window_bounds = array<i64: 32, 32>}, {pipeline_mode = #tpu.pipeline_mode<synchronous>, transform_indices = @transform_6, window_bounds = array<i64: 1, 32>}, {pipeline_mode = #tpu.pipeline_mode<synchronous>, transform_indices = @transform_7, window_bounds = array<i64: 32, 32>}, {pipeline_mode = #tpu.pipeline_mode<synchronous>, transform_indices = @transform_8, window_bounds = array<i64: 1, 32>}, {pipeline_mode = #tpu.pipeline_mode<synchronous>, transform_indices = @transform_9, window_bounds = array<i64: 32, 128>}, {pipeline_mode = #tpu.pipeline_mode<synchronous>, transform_indices = @transform_10, window_bounds = array<i64: 1, 128>}, {pipeline_mode = #tpu.pipeline_mode<synchronous>, transform_indices = @transform_11, window_bounds = array<i64: 16, 128>}, {pipeline_mode = #tpu.pipeline_mode<synchronous>, transform_indices = @transform_12, window_bounds = array<i64: 2, 8, 128>}]} {
    %c0 = arith.constant 0 : index
    %c0_0 = arith.constant 0 : index
    %0 = vector.load %arg1[%c0, %c0_0] : memref<16x32xf32, #tpu.memory_space<vmem>>, vector<16x32xf32>
    %c0_1 = arith.constant 0 : index
    %c0_2 = arith.constant 0 : index
    %1 = vector.load %arg4[%c0_1, %c0_2] : memref<32x32xf32, #tpu.memory_space<vmem>>, vector<32x32xf32>
    %cst = arith.constant dense<0.000000e+00> : vector<16x32xf32>
    %2 = tpu.matmul %0, %1, %cst {dimension_numbers = #tpu.dot_dimension_numbers<[1], [0], [0], [1], [0, 0, 1, 1], [], []>} : vector<16x32xf32>, vector<32x32xf32>, vector<16x32xf32> -> vector<16x32xf32>
    %c0_3 = arith.constant 0 : index
    %c0_4 = arith.constant 0 : index
    %3 = vector.load %arg5[%c0_3, %c0_4] : memref<1x32xf32, #tpu.memory_space<vmem>>, vector<1x32xf32>
    %4 = vector.broadcast %3 : vector<1x32xf32> to vector<16x32xf32>
    %5 = arith.addf %2, %4 : vector<16x32xf32>
    %c0_5 = arith.constant 0 : index
    %c0_6 = arith.constant 0 : index
    %6 = vector.load %arg2[%c0_5, %c0_6] : memref<16x32xf32, #tpu.memory_space<vmem>>, vector<16x32xf32>
    %c0_7 = arith.constant 0 : index
    %c0_8 = arith.constant 0 : index
    %7 = vector.load %arg6[%c0_7, %c0_8] : memref<32x32xf32, #tpu.memory_space<vmem>>, vector<32x32xf32>
    %cst_9 = arith.constant dense<0.000000e+00> : vector<16x32xf32>
    %8 = tpu.matmul %6, %7, %cst_9 {dimension_numbers = #tpu.dot_dimension_numbers<[1], [0], [0], [1], [0, 0, 1, 1], [], []>} : vector<16x32xf32>, vector<32x32xf32>, vector<16x32xf32> -> vector<16x32xf32>
    %c0_10 = arith.constant 0 : index
    %c0_11 = arith.constant 0 : index
    %9 = vector.load %arg7[%c0_10, %c0_11] : memref<1x32xf32, #tpu.memory_space<vmem>>, vector<1x32xf32>
    %10 = vector.broadcast %9 : vector<1x32xf32> to vector<16x32xf32>
    %11 = arith.addf %8, %10 : vector<16x32xf32>
    %c0_12 = arith.constant 0 : index
    %c0_13 = arith.constant 0 : index
    %12 = vector.load %arg3[%c0_12, %c0_13] : memref<16x32xf32, #tpu.memory_space<vmem>>, vector<16x32xf32>
    %c0_14 = arith.constant 0 : index
    %c0_15 = arith.constant 0 : index
    %13 = vector.load %arg8[%c0_14, %c0_15] : memref<32x32xf32, #tpu.memory_space<vmem>>, vector<32x32xf32>
    %cst_16 = arith.constant dense<0.000000e+00> : vector<16x32xf32>
    %14 = tpu.matmul %12, %13, %cst_16 {dimension_numbers = #tpu.dot_dimension_numbers<[1], [0], [0], [1], [0, 0, 1, 1], [], []>} : vector<16x32xf32>, vector<32x32xf32>, vector<16x32xf32> -> vector<16x32xf32>
    %c0_17 = arith.constant 0 : index
    %c0_18 = arith.constant 0 : index
    %15 = vector.load %arg9[%c0_17, %c0_18] : memref<1x32xf32, #tpu.memory_space<vmem>>, vector<1x32xf32>
    %16 = vector.broadcast %15 : vector<1x32xf32> to vector<16x32xf32>
    %17 = arith.addf %14, %16 : vector<16x32xf32>
    %18 = vector.shape_cast %5 : vector<16x32xf32> to vector<8x2x32xf32>
    %19 = vector.shape_cast %11 : vector<16x32xf32> to vector<8x2x32xf32>
    %20 = vector.shape_cast %17 : vector<16x32xf32> to vector<8x2x32xf32>
    %21 = tpu.iota {dimensions = array<i32: 0>} : vector<8x128xi32>
    %22 = tpu.iota {dimensions = array<i32: 1>} : vector<8x128xi32>
    %23 = arith.cmpi eq, %21, %22 : vector<8x128xi32>
    %24 = arith.extui %23 : vector<8x128xi1> to vector<8x128xi32>
    %25 = arith.sitofp %24 : vector<8x128xi32> to vector<8x128xf32>
    %26 = vector.extract_strided_slice %18 {offsets = [0, 0, 0], sizes = [8, 1, 32], strides = [1, 1, 1]} : vector<8x2x32xf32> to vector<8x1x32xf32>
    %27 = vector.shape_cast %26 : vector<8x1x32xf32> to vector<8x32xf32>
    %28 = vector.shape_cast %27 : vector<8x32xf32> to vector<8x4x8xf32>
    %29 = vector.extract_strided_slice %19 {offsets = [0, 0, 0], sizes = [8, 1, 32], strides = [1, 1, 1]} : vector<8x2x32xf32> to vector<8x1x32xf32>
    %30 = vector.shape_cast %29 : vector<8x1x32xf32> to vector<8x32xf32>
    %31 = vector.shape_cast %30 : vector<8x32xf32> to vector<8x4x8xf32>
    %32 = vector.extract_strided_slice %20 {offsets = [0, 0, 0], sizes = [8, 1, 32], strides = [1, 1, 1]} : vector<8x2x32xf32> to vector<8x1x32xf32>
    %33 = vector.shape_cast %32 : vector<8x1x32xf32> to vector<8x32xf32>
    %34 = vector.shape_cast %33 : vector<8x32xf32> to vector<8x4x8xf32>
    "tpu.trace_start"() <{level = 10 : i32, message = "thd,shd->hts"}> : () -> ()
    %cst_19 = arith.constant dense<0.000000e+00> : vector<4x8x8xf32>
    %35 = tpu.matmul %28, %31, %cst_19 {dimension_numbers = #tpu.dot_dimension_numbers<[2], [2], [0], [0], [0, 1, 0, 0, 1, 0], [1], [1]>} : vector<8x4x8xf32>, vector<8x4x8xf32>, vector<4x8x8xf32> -> vector<4x8x8xf32>
    "tpu.trace_stop"() : () -> ()
    %cst_20 = arith.constant dense<0xFF800000> : vector<4x8xf32>
    %36 = vector.multi_reduction <maximumf>, %35, %cst_20 [2] : vector<4x8x8xf32> to vector<4x8xf32>
    %37 = vector.shape_cast %36 : vector<4x8xf32> to vector<4x8x1xf32>
    %38 = vector.broadcast %37 : vector<4x8x1xf32> to vector<4x8x8xf32>
    %39 = arith.subf %35, %38 : vector<4x8x8xf32>
    %40 = math.exp %39 : vector<4x8x8xf32>
    %cst_21 = arith.constant dense<0.000000e+00> : vector<4x8xf32>
    %41 = vector.multi_reduction <add>, %40, %cst_21 [2] : vector<4x8x8xf32> to vector<4x8xf32>
    %42 = vector.shape_cast %41 : vector<4x8xf32> to vector<4x8x1xf32>
    %43 = tpu.reciprocal %42 {approx = true} : vector<4x8x1xf32> -> vector<4x8x1xf32>
    %44 = vector.broadcast %43 : vector<4x8x1xf32> to vector<4x8x8xf32>
    %45 = arith.mulf %40, %44 : vector<4x8x8xf32>
    "tpu.trace_start"() <{level = 10 : i32, message = "hts,shd->thd"}> : () -> ()
    %cst_22 = arith.constant dense<0.000000e+00> : vector<4x8x8xf32>
    %46 = tpu.matmul %34, %45, %cst_22 {dimension_numbers = #tpu.dot_dimension_numbers<[0], [2], [2], [1], [0, 1, 0, 2, 1, 1], [1], [0]>} : vector<8x4x8xf32>, vector<4x8x8xf32>, vector<4x8x8xf32> -> vector<4x8x8xf32>
    %47 = tpu.transpose %46, [2, 0, 1] : vector<4x8x8xf32> -> vector<8x4x8xf32>
    "tpu.trace_stop"() : () -> ()
    %48 = vector.shape_cast %47 : vector<8x4x8xf32> to vector<8x32xf32>
    %cst_23 = arith.constant dense<0.000000e+00> : vector<8x8xf32>
    %49 = vector.multi_reduction <add>, %45, %cst_23 [0] : vector<4x8x8xf32> to vector<8x8xf32>
    %cst_24 = arith.constant 2.500000e-01 : f32
    %50 = vector.broadcast %cst_24 : f32 to vector<8x8xf32>
    %51 = arith.mulf %49, %50 : vector<8x8xf32>
    %cst_25 = arith.constant dense<0.000000e+00> : vector<8x128xf32>
    %52 = tpu.matmul %51, %25, %cst_25 {dimension_numbers = #tpu.dot_dimension_numbers<[1], [0], [0], [1], [0, 0, 1, 1], [], []>} : vector<8x8xf32>, vector<8x128xf32>, vector<8x128xf32> -> vector<8x128xf32>
    %c0_26 = arith.constant 0 : index
    %c0_27 = arith.constant 0 : index
    %c0_28 = arith.constant 0 : index
    %53 = vector.load %arg13[%c0_26, %c0_27, %c0_28] : memref<2x8x128xf32, #tpu.memory_space<vmem>>, vector<1x8x128xf32>
    %54 = vector.shape_cast %53 : vector<1x8x128xf32> to vector<8x128xf32>
    %55 = vector.shape_cast %52 : vector<8x128xf32> to vector<1x8x128xf32>
    tpu.vector_store %arg13[%c0_26, %c0_27, %c0_28], %55 {strides = array<i32>} : memref<2x8x128xf32, #tpu.memory_space<vmem>>, vector<1x8x128xf32>,
    %56 = vector.extract_strided_slice %18 {offsets = [0, 1, 0], sizes = [8, 1, 32], strides = [1, 1, 1]} : vector<8x2x32xf32> to vector<8x1x32xf32>
    %57 = vector.shape_cast %56 : vector<8x1x32xf32> to vector<8x32xf32>
    %58 = vector.shape_cast %57 : vector<8x32xf32> to vector<8x4x8xf32>
    %59 = vector.extract_strided_slice %19 {offsets = [0, 1, 0], sizes = [8, 1, 32], strides = [1, 1, 1]} : vector<8x2x32xf32> to vector<8x1x32xf32>
    %60 = vector.shape_cast %59 : vector<8x1x32xf32> to vector<8x32xf32>
    %61 = vector.shape_cast %60 : vector<8x32xf32> to vector<8x4x8xf32>
    %62 = vector.extract_strided_slice %20 {offsets = [0, 1, 0], sizes = [8, 1, 32], strides = [1, 1, 1]} : vector<8x2x32xf32> to vector<8x1x32xf32>
    %63 = vector.shape_cast %62 : vector<8x1x32xf32> to vector<8x32xf32>
    %64 = vector.shape_cast %63 : vector<8x32xf32> to vector<8x4x8xf32>
    "tpu.trace_start"() <{level = 10 : i32, message = "thd,shd->hts"}> : () -> ()
    %cst_29 = arith.constant dense<0.000000e+00> : vector<4x8x8xf32>
    %65 = tpu.matmul %58, %61, %cst_29 {dimension_numbers = #tpu.dot_dimension_numbers<[2], [2], [0], [0], [0, 1, 0, 0, 1, 0], [1], [1]>} : vector<8x4x8xf32>, vector<8x4x8xf32>, vector<4x8x8xf32> -> vector<4x8x8xf32>
    "tpu.trace_stop"() : () -> ()
    %cst_30 = arith.constant dense<0xFF800000> : vector<4x8xf32>
    %66 = vector.multi_reduction <maximumf>, %65, %cst_30 [2] : vector<4x8x8xf32> to vector<4x8xf32>
    %67 = vector.shape_cast %66 : vector<4x8xf32> to vector<4x8x1xf32>
    %68 = vector.broadcast %67 : vector<4x8x1xf32> to vector<4x8x8xf32>
    %69 = arith.subf %65, %68 : vector<4x8x8xf32>
    %70 = math.exp %69 : vector<4x8x8xf32>
    %cst_31 = arith.constant dense<0.000000e+00> : vector<4x8xf32>
    %71 = vector.multi_reduction <add>, %70, %cst_31 [2] : vector<4x8x8xf32> to vector<4x8xf32>
    %72 = vector.shape_cast %71 : vector<4x8xf32> to vector<4x8x1xf32>
    %73 = tpu.reciprocal %72 {approx = true} : vector<4x8x1xf32> -> vector<4x8x1xf32>
    %74 = vector.broadcast %73 : vector<4x8x1xf32> to vector<4x8x8xf32>
    %75 = arith.mulf %70, %74 : vector<4x8x8xf32>
    "tpu.trace_start"() <{level = 10 : i32, message = "hts,shd->thd"}> : () -> ()
    %cst_32 = arith.constant dense<0.000000e+00> : vector<4x8x8xf32>
    %76 = tpu.matmul %64, %75, %cst_32 {dimension_numbers = #tpu.dot_dimension_numbers<[0], [2], [2], [1], [0, 1, 0, 2, 1, 1], [1], [0]>} : vector<8x4x8xf32>, vector<4x8x8xf32>, vector<4x8x8xf32> -> vector<4x8x8xf32>
    %77 = tpu.transpose %76, [2, 0, 1] : vector<4x8x8xf32> -> vector<8x4x8xf32>
    "tpu.trace_stop"() : () -> ()
    %78 = vector.shape_cast %77 : vector<8x4x8xf32> to vector<8x32xf32>
    %cst_33 = arith.constant dense<0.000000e+00> : vector<8x8xf32>
    %79 = vector.multi_reduction <add>, %75, %cst_33 [0] : vector<4x8x8xf32> to vector<8x8xf32>
    %cst_34 = arith.constant 2.500000e-01 : f32
    %80 = vector.broadcast %cst_34 : f32 to vector<8x8xf32>
    %81 = arith.mulf %79, %80 : vector<8x8xf32>
    %cst_35 = arith.constant dense<0.000000e+00> : vector<8x128xf32>
    %82 = tpu.matmul %81, %25, %cst_35 {dimension_numbers = #tpu.dot_dimension_numbers<[1], [0], [0], [1], [0, 0, 1, 1], [], []>} : vector<8x8xf32>, vector<8x128xf32>, vector<8x128xf32> -> vector<8x128xf32>
    %c1 = arith.constant 1 : index
    %c0_36 = arith.constant 0 : index
    %c0_37 = arith.constant 0 : index
    %83 = vector.load %arg13[%c1, %c0_36, %c0_37] : memref<2x8x128xf32, #tpu.memory_space<vmem>>, vector<1x8x128xf32>
    %84 = vector.shape_cast %83 : vector<1x8x128xf32> to vector<8x128xf32>
    %85 = vector.shape_cast %82 : vector<8x128xf32> to vector<1x8x128xf32>
    tpu.vector_store %arg13[%c1, %c0_36, %c0_37], %85 {strides = array<i32>} : memref<2x8x128xf32, #tpu.memory_space<vmem>>, vector<1x8x128xf32>,
    %86 = vector.shape_cast %48 : vector<8x32xf32> to vector<8x1x32xf32>
    %87 = vector.shape_cast %78 : vector<8x32xf32> to vector<8x1x32xf32>
    %88 = tpu.concatenate %86, %87 in 1 : vector<8x1x32xf32>, vector<8x1x32xf32> -> vector<8x2x32xf32>
    %89 = vector.shape_cast %88 : vector<8x2x32xf32> to vector<16x32xf32>
    %c0_38 = arith.constant 0 : index
    %c0_39 = arith.constant 0 : index
    %90 = vector.load %arg10[%c0_38, %c0_39] : memref<32x128xf32, #tpu.memory_space<vmem>>, vector<32x128xf32>
    %cst_40 = arith.constant dense<0.000000e+00> : vector<16x128xf32>
    %91 = tpu.matmul %89, %90, %cst_40 {dimension_numbers = #tpu.dot_dimension_numbers<[1], [0], [0], [1], [0, 0, 1, 1], [], []>} : vector<16x32xf32>, vector<32x128xf32>, vector<16x128xf32> -> vector<16x128xf32>
    %c0_41 = arith.constant 0 : index
    %c0_42 = arith.constant 0 : index
    %92 = vector.load %arg11[%c0_41, %c0_42] : memref<1x128xf32, #tpu.memory_space<vmem>>, vector<1x128xf32>
    %93 = vector.broadcast %92 : vector<1x128xf32> to vector<16x128xf32>
    %94 = arith.addf %91, %93 : vector<16x128xf32>
    %c0_43 = arith.constant 0 : index
    %c0_44 = arith.constant 0 : index
    %95 = vector.load %arg12[%c0_43, %c0_44] : memref<16x128xf32, #tpu.memory_space<vmem>>, vector<16x128xf32>
    tpu.vector_store %arg12[%c0_43, %c0_44], %94 {strides = array<i32>} : memref<16x128xf32, #tpu.memory_space<vmem>>, vector<16x128xf32>,
    return
  }
  func.func @transform_0(%arg0: i32) -> (i32, i32) {
    %c0_i32 = arith.constant 0 : i32
    %c0_i32_0 = arith.constant 0 : i32
    %c0_i32_1 = arith.constant 0 : i32
    return %c0_i32, %c0_i32_0 : i32, i32
  }
  func.func @transform_1(%arg0: i32) -> (i32, i32) {
    %c0_i32 = arith.constant 0 : i32
    %c0_i32_0 = arith.constant 0 : i32
    %c0_i32_1 = arith.constant 0 : i32
    return %c0_i32, %c0_i32_0 : i32, i32
  }
  func.func @transform_2(%arg0: i32) -> (i32, i32) {
    %c0_i32 = arith.constant 0 : i32
    %c0_i32_0 = arith.constant 0 : i32
    %c0_i32_1 = arith.constant 0 : i32
    return %c0_i32, %c0_i32_0 : i32, i32
  }
  func.func @transform_3(%arg0: i32) -> (i32, i32) {
    %c0_i32 = arith.constant 0 : i32
    %c0_i32_0 = arith.constant 0 : i32
    %c0_i32_1 = arith.constant 0 : i32
    return %c0_i32, %c0_i32_0 : i32, i32
  }
  func.func @transform_4(%arg0: i32) -> (i32, i32) {
    %c0_i32 = arith.constant 0 : i32
    %c0_i32_0 = arith.constant 0 : i32
    %c0_i32_1 = arith.constant 0 : i32
    return %c0_i32, %c0_i32_0 : i32, i32
  }
  func.func @transform_5(%arg0: i32) -> (i32, i32) {
    %c0_i32 = arith.constant 0 : i32
    %c0_i32_0 = arith.constant 0 : i32
    %c0_i32_1 = arith.constant 0 : i32
    return %c0_i32, %c0_i32_0 : i32, i32
  }
  func.func @transform_6(%arg0: i32) -> (i32, i32) {
    %c0_i32 = arith.constant 0 : i32
    %c0_i32_0 = arith.constant 0 : i32
    %c0_i32_1 = arith.constant 0 : i32
    return %c0_i32, %c0_i32_0 : i32, i32
  }
  func.func @transform_7(%arg0: i32) -> (i32, i32) {
    %c0_i32 = arith.constant 0 : i32
    %c0_i32_0 = arith.constant 0 : i32
    %c0_i32_1 = arith.constant 0 : i32
    return %c0_i32, %c0_i32_0 : i32, i32
  }
  func.func @transform_8(%arg0: i32) -> (i32, i32) {
    %c0_i32 = arith.constant 0 : i32
    %c0_i32_0 = arith.constant 0 : i32
    %c0_i32_1 = arith.constant 0 : i32
    return %c0_i32, %c0_i32_0 : i32, i32
  }
  func.func @transform_9(%arg0: i32) -> (i32, i32) {
    %c0_i32 = arith.constant 0 : i32
    %c0_i32_0 = arith.constant 0 : i32
    %c0_i32_1 = arith.constant 0 : i32
    return %c0_i32, %c0_i32_0 : i32, i32
  }
  func.func @transform_10(%arg0: i32) -> (i32, i32) {
    %c0_i32 = arith.constant 0 : i32
    %c0_i32_0 = arith.constant 0 : i32
    %c0_i32_1 = arith.constant 0 : i32
    return %c0_i32, %c0_i32_0 : i32, i32
  }
  func.func @transform_11(%arg0: i32) -> (i32, i32) {
    %c0_i32 = arith.constant 0 : i32
    %c0_i32_0 = arith.constant 0 : i32
    %c0_i32_1 = arith.constant 0 : i32
    return %c0_i32, %c0_i32_0 : i32, i32
  }
  func.func @transform_12(%arg0: i32) -> (i32, i32, i32) {
    %c0_i32 = arith.constant 0 : i32
    %c0_i32_0 = arith.constant 0 : i32
    %c0_i32_1 = arith.constant 0 : i32
    %c0_i32_2 = arith.constant 0 : i32
    return %c0_i32, %c0_i32_0, %c0_i32_1 : i32, i32, i32
  }
}

</mosaic_0001>

<bundles_post_ra>
// kernel: my_multihead_attention.1
= control target key start
LH: loop header
LB: loop body
LE: loop exit
PB: predicated region body
PF: predicated region fallthrough
CT: control target
= control target key end

     0   :  { %18 = vsyncpa [#allocation3], 0  ;;  %vm55_vm0 = vcmask 261120   ;;  %s9942_s0 = inlined_call_operand.vmem [shape: f32[16,32], index: 0, kind: input, shape index: {}]   ;;  %s9943_s1 = inlined_call_operand.vmem [shape: f32[16,32], index: 1, kind: input, shape index: {}]   ;;  %s9944_s2 = inlined_call_operand.vmem [shape: f32[16,32], index: 2, kind: input, shape index: {}]   ;;  %s9945_s3 = inlined_call_operand.vmem [shape: f32[32,32], index: 3, kind: input, shape index: {}]   ;;  %s9946_s4 = inlined_call_operand.vmem [shape: f32[1,32], index: 4, kind: input, shape index: {}]   ;;  %s9947_s5 = inlined_call_operand.vmem [shape: f32[32,32], index: 5, kind: input, shape index: {}]   ;;  %s9948_s6 = inlined_call_operand.vmem [shape: f32[1,32], index: 6, kind: input, shape index: {}]   ;;  %s9949_s7 = inlined_call_operand.vmem [shape: f32[32,32], index: 7, kind: input, shape index: {}]   ;;  %s9950_s8 = inlined_call_operand.vmem [shape: f32[1,32], index: 8, kind: input, shape index: {}]   ;;  %s9951_s9 = inlined_call_operand.vmem [shape: f32[32,128], index: 9, kind: input, shape index: {}]   ;;  %s9952_s10 = inlined_call_operand.vmem [shape: f32[1,128], index: 10, kind: input, shape index: {}]   ;;  %s9953_s11 = inlined_call_operand.hbm [shape: f32[16,128], index: 11, kind: output, shape index: {0}]   ;;  %s9954_s12 = inlined_call_operand.hbm [shape: f32[2,8,128], index: 12, kind: output, shape index: {1}]  }
   0x1   :  { %v142_v0 = vld [vmem:[%s9947_s5 + $0x18] sm:$0xff]  ;;  %v141_v1 = vld [vmem:[%s9947_s5 + $0x10] sm:$0xff]  ;;  %v137_v2 = vld [vmem:[%s9943_s1] sm:$0xff] }
   0x2   :  { %8135 = vmatprep.subr.mxu1 %v142_v0  ;;  %v140_v3 = vld [vmem:[%s9947_s5 + $0x8] sm:$0xff]  ;;  %8143 = vmatprep.mubr.msk.f32.mxu1 %vm55_vm0, %v137_v2  ;;  %v47_v4 = vld [vmem:[%s9945_s3 + $0x18] sm:$0xff]  ;;  %v46_v5 = vld [vmem:[%s9945_s3 + $0x10] sm:$0xff] }
   0x3   :  { %8136 = vmatpush3.msra.mxu1 %v142_v0  ;;  %8124 = vmatprep.subr.mxu0 %v47_v4  ;;  %v139_v6 = vld [vmem:[%s9947_s5] sm:$0xff]  ;;  %v45_v7 = vld [vmem:[%s9945_s3 + $0x8] sm:$0xff] }
   0x4   :  { %8137 = vmatprep.subr.mxu1 %v141_v1  ;;  %8125 = vmatpush3.msra.mxu0 %v47_v4 }
   0x5   :  { %8138 = vmatpush3.msra.mxu1 %v141_v1 }
   0x6   :  { %19 = vsyncpa [#allocation5], 0  ;;  %8139 = vmatprep.subr.mxu1 %v140_v3  ;;  %8126 = vmatprep.subr.mxu0 %v46_v5  ;;  %v138_v8 = vld [vmem:[%s9943_s1 + $0x8] sm:$0xff]  ;;  %v44_v9 = vld [vmem:[%s9945_s3] sm:$0xff]  ;;  %v8348_v12 = vmov 1983009808   ;;  %v9955_v14 = vlaneseq }
   0x7   :  { %8140 = vmatpush3.msra.mxu1 %v140_v3  ;;  %8127 = vmatpush3.msra.mxu0 %v46_v5  ;;  %v42_v10 = vld [vmem:[%s9942_s0] sm:$0xff]  ;;  %v43_v11 = vld [vmem:[%s9942_s0 + $0x8] sm:$0xff]  ;;  %v329_v13 = vunpack.c.l.s4 %v8348_v12  ;;  %s8349_s27 = smov 120   ;;  %v236_v41 = vld [vmem:[%s9949_s7 + $0x18] sm:$0xff]  ;;  %v8352_v54 = vmov 1934713408  }
   0x8   :  { %8141 = vmatprep.subr.mxu1 %v139_v6  ;;  %8128 = vmatprep.subr.mxu0 %v45_v7  ;;  %v8468_v16 = vshrl.u32 %v9955_v14, 7  ;;  %v7922_v17 = vld [vmem:[%s9948_s6] ss:$0 sm:$0xff]  ;;  %s8350_s6 = smov 112   ;;  %v235_v44 = vld [vmem:[%s9949_s7 + $0x10] sm:$0xff]  ;;  %v234_v46 = vld [vmem:[%s9949_s7 + $0x8] sm:$0xff]  ;;  %v538_v55 = vunpack.c.l.s4 %v8352_v54 }
   0x9   :  { %8142 = vmatpush3.msra.mxu1 %v139_v6  ;;  %8129 = vmatpush3.msra.mxu0 %v45_v7  ;;  %v330_v15 = vunpack.c.0.s8 %v329_v13  ;;  %v7919_v22 = vld [vmem:[%s9946_s4] ss:$0 sm:$0xff]  ;;  %s8351_s4 = smov 104   ;;  %v232_v50 = vld [vmem:[%s9944_s2 + $0x8] sm:$0xff]  ;;  %vm8354_vm1 = vmmov 0   ;;  %vm1961_vm2 = vcmask 64512  }
   0xa   :  { %8144 = vmatmul.mubr.msk.f32.vlgmr.msra.gmra.mxu1 %vm55_vm0, %v138_v8  ;;  %8130 = vmatprep.subr.mxu0 %v44_v9  ;;  %10020 = vst [vmem:[#allocation8_spill] sm:$0xff] %v8468_v16  ;;  %v233_v48 = vld [vmem:[%s9949_s7] sm:$0xff]  ;;  %v539_v58 = vunpack.c.0.s8 %v538_v55  ;;  %s8357_s22 = smov 16   ;;  %s8358_s5 = smov 24   ;;  %vm7386_vm4 = vcmask 130048   ;;  %vm7395_vm5 = vcmask 195584  }
   0xb   :  { %8131 = vmatpush3.msra.mxu0 %v44_v9  ;;  %8132 = vmatprep.mubr.msk.f32.mxu0 %vm55_vm0, %v42_v10  ;;  %v8474_v18 = vsub.s32 %v330_v15, %v8468_v16  ;;  %v231_v49 = vld [vmem:[%s9944_s2] sm:$0xff]  ;;  %vm7744_vm6 = vcmask 1040384  }
   0xc   :  { %8133 = vmatmul.mubr.msk.f32.vlgmr.msra.gmra.mxu0 %vm55_vm0, %v43_v11  ;;  %8146 = vmatprep.subr.mxu0 %v236_v41  ;;  %v8656_v61 = vsub.s32 %v539_v58, %v8468_v16 }
   0xd   :  { %8147 = vmatpush3.msra.mxu0 %v236_v41  ;;  %8154 = vmatprep.mubr.msk.f32.mxu0 %vm55_vm0, %v231_v49 }
   0xe   :  { %8148 = vmatprep.subr.mxu0 %v235_v44 }
   0xf   :  { %8149 = vmatpush3.msra.mxu0 %v235_v44 }
  0x10   :  { %8150 = vmatprep.subr.mxu0 %v234_v46 }
  0x11   :  { %8151 = vmatpush3.msra.mxu0 %v234_v46 }
  0x12   :  { %8152 = vmatprep.subr.mxu0 %v233_v48 }
  0x13   :  { %8153 = vmatpush3.msra.mxu0 %v233_v48 }
  0x14   :  { %8155 = vmatmul.mubr.msk.f32.vlgmr.msra.gmra.mxu0 %vm55_vm0, %v232_v50 }
  0xca   :  { %v8145_v19 = vpop.f32.mrf.mxu1 }
  0xcb   :  { %v228_v20 = vadd.f32 %v8145_v19, %v7922_v17 }
  0xcc   :  { %v8134_v24 = vpop.f32.mrf.mxu0  ;;  %v222_v28 = vpop.f32.mrf.mxu1 }
  0xcd   :  { %v8477_v21 = vrot.slane %v228_v20, %v8474_v18  ;;  %v134_v25 = vadd.f32 %v8134_v24, %v7919_v22  ;;  %v223_v29 = vadd.f32 %v7922_v17, %v222_v28  ;;  %v388_v30 = vcombine.high %v228_v20, %v228_v20 }
  0xce   :  { %v128_v37 = vpop.f32.mrf.mxu0 }
  0xcf   :  { %10021 = vst [vmem:[#allocation9_spill] sm:$0xff] %v8477_v21  ;;  %672 = vrot.lane.b32.xlu0 %v8477_v21, %s8349_s27  ;;  %v8486_v23 = vcombine.high %v8477_v21, %v8477_v21  ;;  %v8493_v26 = vrot.slane %v134_v25, %v8474_v18  ;;  %v371_v31 = vcombine.high %v223_v29, %v223_v29 }
  0xd0   :  { %v8516_v32 = vrot.slane %v223_v29, %v8474_v18  ;;  %v8521_v33 = vrot.slane %v388_v30, %v8474_v18  ;;  %v129_v38 = vadd.f32 %v7919_v22, %v128_v37  ;;  %v344_v40 = vcombine.high %v134_v25, %v134_v25 }
  0xd1   :  { %674 = vrot.lane.b32.xlu1 %v8486_v23, %s8349_s27  ;;  %10022 = vst [vmem:[#allocation10_spill] sm:$0xff] %v8493_v26  ;;  %v8503_v27 = vcombine.high %v8493_v26, %v8493_v26  ;;  %v8524_v34 = vrot.slane %v371_v31, %v8474_v18 }
  0xd2   :  { %10024 = vst [vmem:[#allocation12_spill] sm:$0xff] %v8521_v33  ;;  %v8534_v35 = vcombine.high %v8521_v33, %v8521_v33  ;;  %v8542_v36 = vcombine.high %v8516_v32, %v8516_v32  ;;  %v8555_v39 = vrot.slane %v129_v38, %v8474_v18  ;;  %v327_v42 = vcombine.high %v129_v38, %v129_v38 }
  0xd3   :  { %696 = vrot.lane.b32.xlu0 %v8477_v21, %s8350_s6  ;;  %10023 = vst [vmem:[#allocation11_spill] sm:$0xff] %v8503_v27  ;;  %10025 = vst [vmem:[#allocation13_spill] sm:$0xff] %v8524_v34  ;;  %v8574_v45 = vrot.slane %v344_v40, %v8474_v18  ;;  %v8623_v52 = vcombine.high %v8524_v34, %v8524_v34 }
  0xd4   :  { %10026 = vst [vmem:[#allocation14_spill] sm:$0xff] %v8542_v36  ;;  %10027 = vst [vmem:[#allocation15_spill] sm:$0xff] %v8555_v39  ;;  %v8568_v43 = vcombine.high %v8555_v39, %v8555_v39  ;;  %v8582_v47 = vrot.slane %v327_v42, %v8474_v18 }
  0xd5   :  { %698 = vrot.lane.b32.xlu1 %v8486_v23, %s8350_s6  ;;  %10029 = vst [vmem:[#allocation17_spill] sm:$0xff] %v8574_v45  ;;  %v8602_v51 = vcombine.high %v8574_v45, %v8574_v45 }
  0xd6   :  { %10028 = vst [vmem:[#allocation16_spill] sm:$0xff] %v8568_v43  ;;  %10030 = vst [vmem:[#allocation18_spill] sm:$0xff] %v8582_v47  ;;  %v8639_v53 = vcombine.high %v8582_v47, %v8582_v47 }
  0xd7   :  { %720 = vrot.lane.b32.xlu0 %v8477_v21, %s8351_s4  ;;  %10031 = vst [vmem:[#allocation19_spill] sm:$0xff] %v8602_v51 }
  0xd8   :  { %10032 = vst [vmem:[#allocation20_spill] sm:$0xff] %v8639_v53 }
  0xd9   :  { %722 = vrot.lane.b32.xlu1 %v8486_v23, %s8351_s4 }
  0xdb   :  { %472 = vrot.lane.b32.xlu0 %v8493_v26, %s8349_s27 }
  0xdd   :  { %474 = vrot.lane.b32.xlu1 %v8503_v27, %s8349_s27 }
  0xdf   :  { %496 = vrot.lane.b32.xlu0 %v8493_v26, %s8350_s6 }
  0xe1   :  { %498 = vrot.lane.b32.xlu1 %v8503_v27, %s8350_s6 }
  0xe3   :  { %520 = vrot.lane.b32.xlu0 %v8493_v26, %s8351_s4 }
  0xe5   :  { %522 = vrot.lane.b32.xlu1 %v8503_v27, %s8351_s4 }
  0xe7   :  { %664 = vrot.lane.b32.xlu0 %v8516_v32, %s8349_s27 }
  0xe9   :  { %668 = vrot.lane.b32.xlu1 %v8524_v34, %s8349_s27 }
  0xeb   :  { %676 = vrot.lane.b32.xlu0 %v8521_v33, %s8349_s27 }
  0xed   :  { %678 = vrot.lane.b32.xlu1 %v8534_v35, %s8349_s27 }
  0xef   :  { %688 = vrot.lane.b32.xlu0 %v8516_v32, %s8350_s6 }
  0xf1   :  { %690 = vrot.lane.b32.xlu1 %v8542_v36, %s8350_s6 }
  0xf3   :  { %700 = vrot.lane.b32.xlu0 %v8521_v33, %s8350_s6 }
  0xf5   :  { %702 = vrot.lane.b32.xlu1 %v8534_v35, %s8350_s6 }
  0xf7   :  { %712 = vrot.lane.b32.xlu0 %v8516_v32, %s8351_s4 }
  0xf9   :  { %714 = vrot.lane.b32.xlu1 %v8542_v36, %s8351_s4 }
  0xfb   :  { %724 = vrot.lane.b32.xlu0 %v8521_v33, %s8351_s4 }
  0xfd   :  { %726 = vrot.lane.b32.xlu1 %v8534_v35, %s8351_s4 }
  0xff   :  { %464 = vrot.lane.b32.xlu0 %v8555_v39, %s8349_s27 }
 0x101   :  { %466 = vrot.lane.b32.xlu1 %v8568_v43, %s8349_s27 }
 0x103   :  { %476 = vrot.lane.b32.xlu0 %v8574_v45, %s8349_s27 }
 0x105   :  { %468 = vrot.lane.b32.xlu1 %v8582_v47, %s8349_s27 }
 0x107   :  { %488 = vrot.lane.b32.xlu0 %v8555_v39, %s8350_s6 }
 0x109   :  { %478 = vrot.lane.b32.xlu1 %v8602_v51, %s8349_s27 }
 0x10b   :  { %500 = vrot.lane.b32.xlu0 %v8574_v45, %s8350_s6 }
 0x10d   :  { %490 = vrot.lane.b32.xlu1 %v8568_v43, %s8350_s6 }
 0x10f   :  { %512 = vrot.lane.b32.xlu0 %v8555_v39, %s8351_s4 }
 0x111   :  { %502 = vrot.lane.b32.xlu1 %v8602_v51, %s8350_s6 }
 0x113   :  { %666 = vrot.lane.b32.xlu0 %v8542_v36, %s8349_s27 }
 0x115   :  { %514 = vrot.lane.b32.xlu1 %v8568_v43, %s8351_s4 }
 0x117   :  { %692 = vrot.lane.b32.xlu0 %v8524_v34, %s8350_s6 }
 0x119   :  { %670 = vrot.lane.b32.xlu1 %v8623_v52, %s8349_s27 }
 0x11b   :  { %716 = vrot.lane.b32.xlu0 %v8524_v34, %s8351_s4 }
 0x11d   :  { %694 = vrot.lane.b32.xlu1 %v8623_v52, %s8350_s6 }
 0x11f   :  { %492 = vrot.lane.b32.xlu0 %v8582_v47, %s8350_s6 }
 0x121   :  { %718 = vrot.lane.b32.xlu1 %v8623_v52, %s8351_s4 }
 0x123   :  { %516 = vrot.lane.b32.xlu0 %v8582_v47, %s8351_s4 }
 0x125   :  { %470 = vrot.lane.b32.xlu1 %v8639_v53, %s8349_s27 }
 0x129   :  { %494 = vrot.lane.b32.xlu1 %v8639_v53, %s8350_s6 }
 0x12d   :  { %518 = vrot.lane.b32.xlu1 %v8639_v53, %s8351_s4 }
 0x141   :  { %v8647_v56 = vpop.permute.xlu0 %672 }
 0x142   :  { %10033 = vst [vmem:[#allocation21_spill] sm:$0xff] %v8647_v56  ;;  %v800_v62 = vcombine.low %v8477_v21, %v8647_v56 }
 0x143   :  { %v8649_v57 = vpop.permute.xlu1 %674 }
 0x144   :  { %v816_v1 = vcombine.low %v8486_v23, %v8649_v57  ;;  %v807_v6 = vrot.slane %v800_v62, %v8656_v61 }
 0x145   :  { %v8651_v59 = vpop.permute.xlu0 %696 }
 0x146   :  { %10034 = vst [vmem:[#allocation22_spill] sm:$0xff] %v8651_v59  ;;  %v823_v9 = vrot.slane %v816_v1, %v8656_v61 }
 0x147   :  { %v8653_v60 = vpop.permute.xlu1 %698 }
 0x149   :  { %v8660_v63 = vpop.permute.xlu0 %720 }
 0x14a   :  { %10035 = vst [vmem:[#allocation23_spill] sm:$0xff] %v8660_v63  ;;  %v808_v0 = vcombine.low %v8651_v59, %v8660_v63 }
 0x14b   :  { %v8666_v2 = vpop.permute.xlu1 %722 }
 0x14c   :  { %10036 = vst [vmem:[#allocation24_spill] sm:$0xff] %v8666_v2  ;;  %v824_v3 = vcombine.low %v8653_v60, %v8666_v2  ;;  %v815_v4 = vrot.slane %v808_v0, %v8656_v61 }
 0x14d   :  { %v8671_v5 = vpop.permute.xlu0 %472 }
 0x14e   :  { %10037 = vst [vmem:[#allocation25_spill] sm:$0xff] %v8671_v5  ;;  %v1184_v8 = vcombine.low %v807_v6, %v815_v4  ;;  %v831_v10 = vrot.slane %v824_v3, %v8656_v61 }
 0x14f   :  { %v8674_v7 = vpop.permute.xlu1 %474 }
 0x150   :  { %10038 = vst [vmem:[#allocation26_spill] sm:$0xff] %v8674_v7  ;;  %v1191_v12 = vrot.slane %v1184_v8, %v8474_v18  ;;  %v1192_v13 = vcombine.low %v823_v9, %v831_v10 }
 0x151   :  { %v8678_v11 = vpop.permute.xlu0 %496 }
 0x152   :  { %10039 = vst [vmem:[#allocation27_spill] sm:$0xff] %v8678_v11  ;;  %1352 = vxpose.xlu0.b32.start.end [1/1] (short) (narrow) %v1191_v12, 8  ;;  %v1199_v17 = vrot.slane %v1192_v13, %v8474_v18 }
 0x153   :  { %v8681_v15 = vpop.permute.xlu1 %498 }
 0x154   :  { %10040 = vst [vmem:[#allocation28_spill] sm:$0xff] %v8681_v15 }
 0x155   :  { %v8684_v19 = vpop.permute.xlu0 %520 }
 0x156   :  { %10041 = vst [vmem:[#allocation29_spill] sm:$0xff] %v8684_v19  ;;  %1384 = vxpose.xlu1.b32.start.end [1/1] (short) (narrow) %v1199_v17, 8 }
 0x157   :  { %v8686_v20 = vpop.permute.xlu1 %522 }
 0x158   :  { %10042 = vst [vmem:[#allocation30_spill] sm:$0xff] %v8686_v20 }
 0x159   :  { %v8688_v22 = vpop.permute.xlu0 %664 }
 0x15a   :  { %v736_v38 = vcombine.low %v8516_v32, %v8688_v22 }
 0x15b   :  { %v8690_v24 = vpop.permute.xlu1 %668 }
 0x15c   :  { %10043 = vst [vmem:[#allocation31_spill] sm:$0xff] %v8690_v24  ;;  %v743_v44 = vrot.slane %v736_v38, %v8656_v61 }
 0x15d   :  { %v8692_v25 = vpop.permute.xlu0 %676 }
 0x15e   :  { %10044 = vst [vmem:[#allocation32_spill] sm:$0xff] %v8692_v25  ;;  %v832_v48 = vcombine.low %v8521_v33, %v8692_v25 }
 0x15f   :  { %v8694_v28 = vpop.permute.xlu1 %678 }
 0x160   :  { %10045 = vst [vmem:[#allocation33_spill] sm:$0xff] %v8694_v28  ;;  %v839_v0 = vrot.slane %v832_v48, %v8656_v61 }
 0x161   :  { %v8696_v29 = vpop.permute.xlu0 %688 }
 0x163   :  { %v8698_v30 = vpop.permute.xlu1 %690 }
 0x164   :  { %10046 = vst [vmem:[#allocation34_spill] sm:$0xff] %v8698_v30 }
 0x165   :  { %v8700_v31 = vpop.permute.xlu0 %700 }
 0x166   :  { %10047 = vst [vmem:[#allocation35_spill] sm:$0xff] %v8700_v31 }
 0x167   :  { %v8702_v37 = vpop.permute.xlu1 %702 }
 0x168   :  { %10048 = vst [vmem:[#allocation36_spill] sm:$0xff] %v8702_v37 }
 0x169   :  { %v8706_v40 = vpop.permute.xlu0 %712 }
 0x16a   :  { %v744_v41 = vcombine.low %v8696_v29, %v8706_v40 }
 0x16b   :  { %v8710_v42 = vpop.permute.xlu1 %714 }
 0x16c   :  { %10049 = vst [vmem:[#allocation37_spill] sm:$0xff] %v8710_v42  ;;  %v751_v46 = vrot.slane %v744_v41, %v8656_v61 }
 0x16d   :  { %v8716_v49 = vpop.permute.xlu0 %724 }
 0x16e   :  { %10050 = vst [vmem:[#allocation38_spill] sm:$0xff] %v8716_v49  ;;  %v840_v50 = vcombine.low %v8700_v31, %v8716_v49  ;;  %v1152_v54 = vcombine.low %v743_v44, %v751_v46  ;;  %v760_v44 = vcombine.low %v8698_v30, %v8710_v42  ;;  %v768_v31 = vcombine.low %v8524_v34, %v8690_v24 }
 0x16f   :  { %v8720_v55 = vpop.permute.xlu1 %726 }
 0x170   :  { %10051 = vst [vmem:[#allocation39_spill] sm:$0xff] %v8720_v55  ;;  %v1159_v62 = vrot.slane %v1152_v54, %v8474_v18  ;;  %v847_v1 = vrot.slane %v840_v50, %v8656_v61  ;;  %v856_v46 = vcombine.low %v8702_v37, %v8720_v55  ;;  %v848_v50 = vcombine.low %v8534_v35, %v8694_v28 }
 0x171   :  { %v8722_v58 = vpop.permute.xlu0 %464 }
 0x172   :  { %10052 = vst [vmem:[#allocation40_spill] sm:$0xff] %v8722_v58  ;;  %1224 = vxpose.xlu0.b32.start.end [1/1] (short) (narrow) %v1159_v62, 8  ;;  %v1200_v4 = vcombine.low %v839_v0, %v847_v1  ;;  %v855_v33 = vrot.slane %v848_v50, %v8656_v61 }
 0x173   :  { %v8727_v3 = vpop.permute.xlu1 %466 }
 0x174   :  { %10053 = vst [vmem:[#allocation41_spill] sm:$0xff] %v8727_v3  ;;  %v1207_v8 = vrot.slane %v1200_v4, %v8474_v18  ;;  %v767_v4 = vrot.slane %v760_v44, %v8656_v61 }
 0x175   :  { %v8729_v6 = vpop.permute.xlu0 %476 }
 0x176   :  { %10054 = vst [vmem:[#allocation42_spill] sm:$0xff] %v8729_v6  ;;  %1416 = vxpose.xlu0.b32.start.end [1/1] (short) (narrow) %v1207_v8, 8  ;;  %v863_v8 = vrot.slane %v856_v46, %v8656_v61  ;;  %v775_v46 = vrot.slane %v768_v31, %v8656_v61 }
 0x177   :  { %v8732_v9 = vpop.permute.xlu1 %468 }
 0x178   :  { %10055 = vst [vmem:[#allocation43_spill] sm:$0xff] %v8732_v9  ;;  %v1208_v21 = vcombine.low %v855_v33, %v863_v8 }
 0x179   :  { %v8734_v10 = vpop.permute.xlu0 %488 }
 0x17a   :  { %10056 = vst [vmem:[#allocation44_spill] sm:$0xff] %v8734_v10  ;;  %v1215_v50 = vrot.slane %v1208_v21, %v8474_v18 }
 0x17b   :  { %v8736_v12 = vpop.permute.xlu1 %478 }
 0x17c   :  { %10057 = vst [vmem:[#allocation45_spill] sm:$0xff] %v8736_v12 }
 0x17d   :  { %v8738_v13 = vpop.permute.xlu0 %500 }
 0x17e   :  { %10058 = vst [vmem:[#allocation46_spill] sm:$0xff] %v8738_v13 }
 0x17f   :  { %v8740_v17 = vpop.permute.xlu1 %490 }
 0x180   :  { %10059 = vst [vmem:[#allocation47_spill] sm:$0xff] %v8740_v17 }
 0x181   :  { %v8742_v38 = vpop.permute.xlu0 %512 }
 0x182   :  { %10060 = vst [vmem:[#allocation48_spill] sm:$0xff] %v8742_v38 }
 0x183   :  { %v8744_v41 = vpop.permute.xlu1 %502 }
 0x184   :  { %10061 = vst [vmem:[#allocation49_spill] sm:$0xff] %v8744_v41 }
 0x185   :  { %v8750_v48 = vpop.permute.xlu0 %666 }
 0x186   :  { %10062 = vst [vmem:[#allocation50_spill] sm:$0xff] %v8750_v48  ;;  %v752_v54 = vcombine.low %v8542_v36, %v8750_v48 }
 0x187   :  { %v8756_v62 = vpop.permute.xlu1 %514 }
 0x188   :  { %10063 = vst [vmem:[#allocation51_spill] sm:$0xff] %v8756_v62  ;;  %v759_v1 = vrot.slane %v752_v54, %v8656_v61 }
 0x189   :  { %v8758_v0 = vpop.permute.xlu0 %692 }
 0x18a   :  { %10064 = vst [vmem:[#allocation52_spill] sm:$0xff] %v8758_v0  ;;  %v1160_v16 = vcombine.low %v759_v1, %v767_v4 }
 0x18b   :  { %v8763_v14 = vpop.permute.xlu1 %670 }
 0x18c   :  { %10065 = vst [vmem:[#allocation53_spill] sm:$0xff] %v8763_v14  ;;  %v1167_v49 = vrot.slane %v1160_v16, %v8474_v18  ;;  %v784_v56 = vcombine.low %v8623_v52, %v8763_v14 }
 0x18d   :  { %v8768_v25 = vpop.permute.xlu0 %716 }
 0x18e   :  { %10066 = vst [vmem:[#allocation54_spill] sm:$0xff] %v8768_v25  ;;  %v776_v54 = vcombine.low %v8758_v0, %v8768_v25  ;;  %1256 = vxpose.xlu1.b32.start.end [1/1] (short) (narrow) %v1167_v49, 8  ;;  %v791_v31 = vrot.slane %v784_v56, %v8656_v61 }
 0x18f   :  { %v8773_v44 = vpop.permute.xlu1 %694 }
 0x190   :  { %10067 = vst [vmem:[#allocation55_spill] sm:$0xff] %v8773_v44  ;;  %v783_v1 = vrot.slane %v776_v54, %v8656_v61 }
 0x192   :  { %v1168_v4 = vcombine.low %v775_v46, %v783_v1  ;;  %1448 = vxpose.xlu1.b32.start.end [1/1] (short) (narrow) %v1215_v50, 8  ;;  %v8794_v46 = vpop.permute.xlu0 %492 }
 0x193   :  { %v8780_v59 = vpop.permute.xlu1 %718  ;;  %10070 = vst [vmem:[#allocation58_spill] sm:$0xff] %v8794_v46 }
 0x194   :  { %10068 = vst [vmem:[#allocation56_spill] sm:$0xff] %v8780_v59  ;;  %v792_v16 = vcombine.low %v8773_v44, %v8780_v59  ;;  %v1175_v33 = vrot.slane %v1168_v4, %v8474_v18 }
 0x196   :  { %1288 = vxpose.xlu0.b32.start.end [1/1] (short) (narrow) %v1175_v33, 8  ;;  %v799_v49 = vrot.slane %v792_v16, %v8656_v61  ;;  %v8798_v50 = vpop.permute.xlu0 %516 }
 0x197   :  { %v8792_v54 = vpop.permute.xlu1 %470  ;;  %10072 = vst [vmem:[#allocation60_spill] sm:$0xff] %v8798_v50 }
 0x198   :  { %v1176_v8 = vcombine.low %v791_v31, %v799_v49  ;;  %10069 = vst [vmem:[#allocation57_spill] sm:$0xff] %v8792_v54 }
 0x19a   :  { %v1183_v21 = vrot.slane %v1176_v8, %v8474_v18 }
 0x19b   :  { %v8796_v1 = vpop.permute.xlu1 %494 }
 0x19c   :  { %1320 = vxpose.xlu0.b32.start.end [1/1] (short) (narrow) %v1183_v21, 8  ;;  %10071 = vst [vmem:[#allocation59_spill] sm:$0xff] %v8796_v1 }
 0x19f   :  { %v8800_v4 = vpop.permute.xlu1 %518 }
 0x1a0   :  { %10073 = vst [vmem:[#allocation61_spill] sm:$0xff] %v8800_v4 }
 0x1b0   :  { %526 = vrot.lane.b32.xlu1 %v8602_v51, %s8351_s4 }
 0x1c5   :  { %524 = vrot.lane.b32.xlu0 %v8574_v45, %s8351_s4 }
 0x1ce   :  { %v1368_v56 = vpop.trf.xlu0 }
 0x1d2   :  { %v1400_v16 = vpop.trf.xlu1 }
 0x1ee   :  { %v1240_v33 = vpop.trf.xlu0 }
 0x1f2   :  { %v1432_v8 = vpop.trf.xlu0 }
 0x1f3   :  { %v1512_v34 = vcombine.low %v1368_v56, %v1432_v8  ;;  %v1513_v48 = vcombine.high %v1368_v56, %v1432_v8 }
 0x1f5   :  { %v1520_v42 = vrot.slane %v1512_v34, %v8474_v18 }
 0x20a   :  { %v1272_v49 = vpop.trf.xlu1 }
 0x20e   :  { %v1464_v31 = vpop.trf.xlu1 }
 0x20f   :  { %v1528_v21 = vcombine.low %v1400_v16, %v1464_v31  ;;  %v1529_v0 = vcombine.high %v1400_v16, %v1464_v31  ;;  %v1527_v31 = vrot.slane %v1513_v48, %v8474_v18 }
 0x211   :  { %v1536_v24 = vrot.slane %v1528_v21, %v8474_v18  ;;  %v1543_v55 = vrot.slane %v1529_v0, %v8474_v18 }
 0x212   :  { %v1304_v63 = vpop.trf.xlu0 }
 0x213   :  { %v1480_v25 = vcombine.low %v1240_v33, %v1304_v63  ;;  %v1481_v30 = vcombine.high %v1240_v33, %v1304_v63  ;;  %v1576_v44 = vcombine.low %v1520_v42, %v1536_v24  ;;  %v1577_v0 = vcombine.high %v1520_v42, %v1536_v24 }
 0x215   :  { %v1488_v14 = vrot.slane %v1480_v25, %v8474_v18  ;;  %v1495_v2 = vrot.slane %v1481_v30, %v8474_v18  ;;  %v1591_v48 = vrot.slane %v1577_v0, %v8656_v61 }
 0x218   :  { %v1336_v36 = vpop.trf.xlu0 }
 0x219   :  { %v1496_v37 = vcombine.low %v1272_v49, %v1336_v36  ;;  %v1497_v28 = vcombine.high %v1272_v49, %v1336_v36  ;;  %v1584_v36 = vrot.slane %v1576_v44, %v8656_v61  ;;  %v1592_v49 = vcombine.low %v1527_v31, %v1543_v55 }
 0x21b   :  { %v1504_v59 = vrot.slane %v1496_v37, %v8474_v18  ;;  %v1511_v16 = vrot.slane %v1497_v28, %v8474_v18  ;;  %v1600_v28 = vrot.slane %v1592_v49, %v8656_v61 }
 0x21d   :  { %v1544_v63 = vcombine.low %v1488_v14, %v1504_v59  ;;  %v1560_v33 = vcombine.low %v1495_v2, %v1511_v16  ;;  %v1545_v34 = vcombine.high %v1488_v14, %v1504_v59  ;;  %v1561_v8 = vcombine.high %v1495_v2, %v1511_v16 }
 0x21e   :  { %v1593_v14 = vcombine.high %v1527_v31, %v1543_v55  ;;  %v8156_v55 = vpop.f32.mrf.mxu0  ;;  %v7925_v31 = vld [vmem:[%s9950_s8] ss:$0 sm:$0xff]  ;;  %s8356_s8 = smov 8  }
 0x21f   :  { %v1552_v56 = vrot.slane %v1544_v63, %v8656_v61  ;;  %v1568_v30 = vrot.slane %v1560_v33, %v8656_v61  ;;  %v1559_v37 = vrot.slane %v1545_v34, %v8656_v61  ;;  %v1575_v44 = vrot.slane %v1561_v8, %v8656_v61 }
 0x220   :  { %v1607_v2 = vrot.slane %v1593_v14, %v8656_v61  ;;  %v9981_v34 = vmov 0.0   ;;  %v322_v8 = vadd.f32 %v8156_v55, %v7925_v31  ;;  %v568_v55 = vcombine.low %v8582_v47, %v8732_v9 }
 0x221   :  { %v1609_v21 = vcombine.high %v1552_v56, %v1584_v36  ;;  %v1608_v25 = vcombine.low %v1552_v56, %v1584_v36  ;;  %v1613_v59 = vcombine.high %v1568_v30, %v1600_v28  ;;  %v1610_v63 = vcombine.low %v1559_v37, %v1591_v48  ;;  %8157 = vmatprep.subr.mxu1 %v9981_v34  ;;  %v316_v56 = vpop.f32.mrf.mxu0 }
 0x222   :  { %v1615_v24 = vcombine.high %v1575_v44, %v1607_v2  ;;  %v1611_v42 = vcombine.high %v1559_v37, %v1591_v48  ;;  %v1612_v16 = vcombine.low %v1568_v30, %v1600_v28  ;;  %v1614_v33 = vcombine.low %v1575_v44, %v1607_v2  ;;  %8177 = vmatprep.subr.mxu0 %v9981_v34 }
 0x223   :  { %1648 = vxpose.xlu1.b32.start.end [1/1] (short) (narrow) %v1609_v21, 8  ;;  %1616 = vxpose.xlu0.b32.start.end [1/1] (short) (narrow) %v1608_v25, 8  ;;  %v317_v36 = vadd.f32 %v7925_v31, %v316_v56  ;;  %v432_v25 = vcombine.high %v322_v8, %v322_v8  ;;  %v8836_v30 = vrot.slane %v322_v8, %v8474_v18 }
 0x224   :  { %8159 = vmatprep.mubr.msk.f32.mxu1 %vm8354_vm1, %v9981_v34  ;;  %8179 = vmatprep.mubr.msk.f32.mxu0 %vm8354_vm1, %v9981_v34  ;;  %v648_v31 = vcombine.low %v8602_v51, %v8736_v12  ;;  %v536_v8 = vcombine.low %v8555_v39, %v8722_v58 }
 0x225   :  { %v415_v49 = vcombine.high %v317_v36, %v317_v36  ;;  %v8828_v0 = vrot.slane %v317_v36, %v8474_v18  ;;  %v8845_v28 = vrot.slane %v432_v25, %v8474_v18  ;;  %v8851_v48 = vcombine.high %v8836_v30, %v8836_v30 }
 0x226   :  { %v632_v25 = vcombine.low %v8574_v45, %v8729_v6  ;;  %v655_v12 = vrot.slane %v648_v31, %v8656_v61  ;;  %v543_v47 = vrot.slane %v536_v8, %v8656_v61 }
 0x227   :  { %1776 = vxpose.xlu1.b32.start.end [1/1] (short) (narrow) %v1613_v59, 8  ;;  %1680 = vxpose.xlu0.b32.start.end [1/1] (short) (narrow) %v1610_v63, 8  ;;  %v8831_v21 = vrot.slane %v415_v49, %v8474_v18  ;;  %10074 = vst [vmem:[#allocation62_spill] sm:$0xff] %v8845_v28  ;;  %v8857_v14 = vcombine.high %v8845_v28, %v8845_v28  ;;  %v8903_v63 = vpop.permute.xlu1 %526 }
 0x228   :  { %v8863_v59 = vcombine.high %v8828_v0, %v8828_v0  ;;  %10075 = vst [vmem:[#allocation63_spill] sm:$0xff] %v8903_v63  ;;  %v600_v49 = vcombine.low %v8493_v26, %v8671_v5 }
 0x229   :  { %v8842_v37 = vcombine.high %v8831_v21, %v8831_v21 }
 0x22b   :  { %1840 = vxpose.xlu1.b32.start.end [1/1] (short) (narrow) %v1615_v24, 8  ;;  %1712 = vxpose.xlu0.b32.start.end [1/1] (short) (narrow) %v1611_v42, 8  ;;  %v584_v42 = vcombine.low %v8639_v53, %v8792_v54  ;;  %v607_v54 = vrot.slane %v600_v49, %v8656_v61  ;;  %v592_v49 = vcombine.low %v8796_v1, %v8800_v4 }
 0x22d   :  { %v591_v34 = vrot.slane %v584_v42, %v8656_v61 }
 0x22f   :  { %1744 = vxpose.xlu0.b32.start.end [1/1] (short) (narrow) %v1612_v16, 8  ;;  %v616_v16 = vcombine.low %v8503_v27, %v8674_v7  ;;  %v639_v7 = vrot.slane %v632_v25, %v8656_v61 }
 0x231   :  { %v623_v53 = vrot.slane %v616_v16, %v8656_v61  ;;  %v1091_v31 = vcombine.low %v639_v7, %v655_v12 }
 0x233   :  { %1808 = vxpose.xlu0.b32.start.end [1/1] (short) (narrow) %v1614_v33, 8  ;;  %v552_v33 = vcombine.low %v8568_v43, %v8727_v3  ;;  %v575_v3 = vrot.slane %v568_v55, %v8656_v61  ;;  %v1082_v45 = vcombine.low %v607_v54, %v623_v53  ;;  %v560_v54 = vcombine.low %v8740_v17, %v8756_v62 }
 0x235   :  { %v559_v9 = vrot.slane %v552_v33, %v8656_v61  ;;  %v1073_v6 = vcombine.low %v575_v3, %v591_v34  ;;  %v624_v33 = vcombine.low %v8681_v15, %v8686_v20  ;;  %v608_v3 = vcombine.low %v8678_v11, %v8684_v19 }
 0x236   :  { %v1089_v12 = vrot.slane %v1082_v45, %v8656_v61 }
 0x237   :  { %v8905_v44 = vpop.permute.xlu0 %524  ;;  %v1064_v55 = vcombine.low %v543_v47, %v559_v9  ;;  %v576_v47 = vcombine.low %v8794_v46, %v8798_v50  ;;  %v1080_v7 = vrot.slane %v1073_v6, %v8656_v61  ;;  %v615_v6 = vrot.slane %v608_v3, %v8656_v61 }
 0x238   :  { %10076 = vst [vmem:[#allocation64_spill] sm:$0xff] %v8905_v44  ;;  %v640_v42 = vcombine.low %v8738_v13, %v8905_v44  ;;  %v10083_v44 = vld [vmem:[#allocation55_spill] sm:$0xff] }
 0x239   :  { %v1071_v8 = vrot.slane %v1064_v55, %v8656_v61  ;;  %v583_v55 = vrot.slane %v576_v47, %v8656_v61  ;;  %v7993_v4 = vrot.slane %v10083_v44, 9 }
 0x23a   :  { %v647_v9 = vrot.slane %v640_v42, %v8656_v61 }
 0x23b   :  { %v1944_v46 = vcombine.low %v1071_v8, %v1080_v7 }
 0x249   :  { %864 = vrot.lane.b32.xlu1 %v8828_v0, %s8349_s27 }
 0x24d   :  { %868 = vrot.lane.b32.xlu1 %v8831_v21, %s8349_s27 }
 0x251   :  { %870 = vrot.lane.b32.xlu1 %v8842_v37, %s8349_s27 }
 0x255   :  { %874 = vrot.lane.b32.xlu1 %v8851_v48, %s8349_s27 }
 0x259   :  { %878 = vrot.lane.b32.xlu1 %v8857_v14, %s8349_s27 }
 0x25c   :  { %866 = vrot.lane.b32.xlu0 %v8863_v59, %s8349_s27 }
 0x25d   :  { %890 = vrot.lane.b32.xlu1 %v8863_v59, %s8350_s6 }
 0x260   :  { %872 = vrot.lane.b32.xlu0 %v8836_v30, %s8349_s27 }
 0x261   :  { %894 = vrot.lane.b32.xlu1 %v8842_v37, %s8350_s6 }
 0x264   :  { %876 = vrot.lane.b32.xlu0 %v8845_v28, %s8349_s27 }
 0x265   :  { %898 = vrot.lane.b32.xlu1 %v8851_v48, %s8350_s6 }
 0x268   :  { %888 = vrot.lane.b32.xlu0 %v8828_v0, %s8350_s6 }
 0x269   :  { %902 = vrot.lane.b32.xlu1 %v8857_v14, %s8350_s6 }
 0x26c   :  { %892 = vrot.lane.b32.xlu0 %v8831_v21, %s8350_s6 }
 0x26d   :  { %914 = vrot.lane.b32.xlu1 %v8863_v59, %s8351_s4 }
 0x270   :  { %896 = vrot.lane.b32.xlu0 %v8836_v30, %s8350_s6 }
 0x271   :  { %918 = vrot.lane.b32.xlu1 %v8842_v37, %s8351_s4 }
 0x274   :  { %900 = vrot.lane.b32.xlu0 %v8845_v28, %s8350_s6 }
 0x275   :  { %922 = vrot.lane.b32.xlu1 %v8851_v48, %s8351_s4 }
 0x278   :  { %912 = vrot.lane.b32.xlu0 %v8828_v0, %s8351_s4 }
 0x279   :  { %926 = vrot.lane.b32.xlu1 %v8857_v14, %s8351_s4 }
 0x27c   :  { %916 = vrot.lane.b32.xlu0 %v8831_v21, %s8351_s4 }
 0x280   :  { %920 = vrot.lane.b32.xlu0 %v8836_v30, %s8351_s4 }
 0x284   :  { %924 = vrot.lane.b32.xlu0 %v8845_v28, %s8351_s4 }
 0x29f   :  { %v1632_v2 = vpop.trf.xlu0  ;;  %v1664_v24 = vpop.trf.xlu1 }
 0x2a3   :  { %v1696_v56 = vpop.trf.xlu0  ;;  %v1792_v36 = vpop.trf.xlu1 }
 0x2a4   :  { %v1872_v43 = vcombine.low %v1632_v2, %v1696_v56  ;;  %v656_v2 = vcombine.low %v8744_v41, %v8903_v63  ;;  %v631_v56 = vrot.slane %v624_v33, %v8656_v61  ;;  %v567_v33 = vrot.slane %v560_v54, %v8656_v61 }
 0x2a5   :  { %v7930_v54 = vcombine.high %v1071_v8, %v1080_v7 }
 0x2a6   :  { %v1879_v34 = vrot.slane %v1872_v43, %v8474_v18  ;;  %v1098_v43 = vrot.slane %v1091_v31, %v8656_v61  ;;  %v663_v25 = vrot.slane %v656_v2, %v8656_v61  ;;  %v1118_v63 = vcombine.low %v615_v6, %v631_v56 }
 0x2a7   :  { %v1728_v51 = vpop.trf.xlu0  ;;  %v1856_v16 = vpop.trf.xlu1  ;;  %v2046_v7 = vrot.slane %v7930_v54, %v8474_v18 }
 0x2a8   :  { %v1880_v58 = vcombine.low %v1664_v24, %v1728_v51  ;;  %v1896_v53 = vcombine.low %v1792_v36, %v1856_v16  ;;  %v599_v36 = vrot.slane %v592_v49, %v8656_v61  ;;  %v1127_v31 = vcombine.low %v647_v9, %v663_v25 }
 0x2a9   :  { %v1125_v9 = vrot.slane %v1118_v63, %v8656_v61  ;;  %v7931_v6 = vcombine.high %v1089_v12, %v1098_v43 }
 0x2aa   :  { %v1887_v24 = vrot.slane %v1880_v58, %v8474_v18  ;;  %v544_v58 = vcombine.low %v8734_v10, %v8742_v38  ;;  %v1903_v45 = vrot.slane %v1896_v53, %v8474_v18  ;;  %v1945_v38 = vcombine.low %v1089_v12, %v1098_v43 }
 0x2ab   :  { %v1760_v51 = vpop.trf.xlu0  ;;  %v1109_v2 = vcombine.low %v583_v55, %v599_v36  ;;  %v1952_v53 = vrot.slane %v1944_v46, %v8474_v18  ;;  %v1134_v47 = vrot.slane %v1127_v31, %v8656_v61  ;;  %v10077_v43 = vmov 0.0  }
 0x2ac   :  { %v1904_v41 = vcombine.low %v1879_v34, %v1887_v24  ;;  %v551_v49 = vrot.slane %v544_v58, %v8656_v61  ;;  %v1905_v17 = vcombine.high %v1879_v34, %v1887_v24  ;;  %v1959_v25 = vrot.slane %v1945_v38, %v8474_v18 }
 0x2ad   :  { %v1116_v58 = vrot.slane %v1109_v2, %v8656_v61  ;;  %v2132_v8 = vcombine.low %v1125_v9, %v1134_v47 }
 0x2ae   :  { %v1912_v3 = vrot.slane %v1904_v41, %v8656_v61  ;;  %v1919_v41 = vrot.slane %v1905_v17, %v8656_v61  ;;  %v1960_v63 = vcombine.low %v1952_v53, %v1959_v25 }
 0x2af   :  { %v1824_v16 = vpop.trf.xlu0  ;;  %v2146_v36 = vrot.slane %v2132_v8, %v8474_v18 }
 0x2b0   :  { %v1888_v42 = vcombine.low %v1760_v51, %v1824_v16  ;;  %v1100_v16 = vcombine.low %v551_v49, %v567_v33 }
 0x2b2   :  { %v1895_v10 = vrot.slane %v1888_v42, %v8474_v18  ;;  %v1107_v46 = vrot.slane %v1100_v16, %v8656_v61  ;;  %v7935_v42 = vcombine.high %v1125_v9, %v1134_v47 }
 0x2b4   :  { %v1920_v13 = vcombine.low %v1895_v10, %v1903_v45  ;;  %v1921_v51 = vcombine.high %v1895_v10, %v1903_v45  ;;  %v2131_v38 = vcombine.low %v1107_v46, %v1116_v58  ;;  %v7934_v55 = vcombine.high %v1107_v46, %v1116_v58 }
 0x2b5   :  { %v2239_v2 = vrot.slane %v7935_v42, %v8474_v18 }
 0x2b6   :  { %v1928_v56 = vrot.slane %v1920_v13, %v8656_v61  ;;  %v1935_v10 = vrot.slane %v1921_v51, %v8656_v61  ;;  %v2053_v13 = vrot.slane %v7931_v6, %v8474_v18  ;;  %v2139_v33 = vrot.slane %v2131_v38, %v8474_v18 }
 0x2b7   :  { %v2232_v51 = vrot.slane %v7934_v55, %v8474_v18 }
 0x2b8   :  { %v1936_v34 = vcombine.low %v1912_v3, %v1928_v56  ;;  %v1937_v24 = vcombine.high %v1912_v3, %v1928_v56  ;;  %v1938_v17 = vcombine.low %v1919_v41, %v1935_v10  ;;  %v2054_v45 = vcombine.low %v2046_v7, %v2053_v13 }
 0x2b9   :  { %v1939_v49 = vcombine.high %v1919_v41, %v1935_v10  ;;  %v2147_v3 = vcombine.low %v2139_v33, %v2146_v36  ;;  %v2240_v53 = vcombine.low %v2232_v51, %v2239_v2  ;;  %v7980_v2 = vrot.slane %v8688_v22, 9 }
 0x2ba   :  { %8158 = vmatpush3.msra.mxu1 %v1936_v34 }
 0x2bb   :  { %8160 = vmatmul.mubr.msk.f32.vlgmr.msra.gmra.mxu1 %vm1961_vm2, %v1960_v63  ;;  %v8976_v12 = vpop.permute.xlu1 %864  ;;  %8162 = vmatprep.subr.mxu1 %v10077_v43 }
 0x2bc   :  { %8163 = vmatpush3.msra.mxu1 %v1937_v24  ;;  %8164 = vmatprep.mubr.msk.f32.mxu1 %vm8354_vm1, %v10077_v43  ;;  %v936_v22 = vcombine.low %v8828_v0, %v8976_v12 }
 0x2bd   :  { %8167 = vmatprep.subr.mxu1 %v10077_v43 }
 0x2bf   :  { %8165 = vmatmul.mubr.msk.f32.vlgmr.msra.gmra.mxu1 %vm1961_vm2, %v2054_v45  ;;  %v8985_v31 = vpop.permute.xlu1 %868  ;;  %v7981_v45 = vrot.slane %v8696_v29, 9 }
 0x2c0   :  { %8168 = vmatpush3.msra.mxu1 %v1938_v17  ;;  %8169 = vmatprep.mubr.msk.f32.mxu1 %vm8354_vm1, %v10077_v43  ;;  %v7982_v17 = vrot.slane %v8706_v40, 9  ;;  %v7979_v40 = vrot.slane %v8516_v32, 9 }
 0x2c1   :  { %8172 = vmatprep.subr.mxu1 %v10077_v43 }
 0x2c2   :  { %v4059_v1 = vcombine.low %v7979_v40, %v7980_v2  ;;  %v968_v2 = vcombine.low %v8831_v21, %v8985_v31 }
 0x2c3   :  { %8170 = vmatmul.mubr.msk.f32.vlgmr.msra.gmra.mxu1 %vm1961_vm2, %v2147_v3  ;;  %v8993_v16 = vpop.permute.xlu1 %870  ;;  %v4067_v3 = vcombine.low %v7981_v45, %v7982_v17  ;;  %v10080_v17 = vld [vmem:[#allocation56_spill] sm:$0xff] }
 0x2c4   :  { %8173 = vmatpush3.msra.mxu1 %v1939_v49  ;;  %8174 = vmatprep.mubr.msk.f32.mxu1 %vm8354_vm1, %v10077_v43 }
 0x2c5   :  { %8182 = vmatprep.subr.mxu1 %v10077_v43  ;;  %v4074_v50 = vrot.slane %v4067_v3, %v8656_v61 }
 0x2c7   :  { %8175 = vmatmul.mubr.msk.f32.vlgmr.msra.gmra.mxu1 %vm1961_vm2, %v2240_v53  ;;  %v8999_v54 = vpop.permute.xlu1 %874  ;;  %v7999_v53 = vrot.slane %v8486_v23, 9 }
 0x2c8   :  { %8184 = vmatprep.mubr.msk.f32.mxu1 %vm8354_vm1, %v10077_v43  ;;  %v1016_v33 = vcombine.low %v8851_v48, %v8999_v54 }
 0x2ca   :  { %v1023_v45 = vrot.slane %v1016_v33, %v8656_v61 }
 0x2cb   :  { %v9003_v47 = vpop.permute.xlu1 %878 }
 0x2cc   :  { %v1048_v23 = vcombine.low %v8857_v14, %v9003_v47 }
 0x2ce   :  { %v9005_v9 = vpop.permute.xlu0 %866  ;;  %v1055_v44 = vrot.slane %v1048_v23, %v8656_v61  ;;  %v975_v23 = vrot.slane %v968_v2, %v8656_v61 }
 0x2cf   :  { %v9007_v56 = vpop.permute.xlu1 %890  ;;  %v952_v24 = vcombine.low %v8863_v59, %v9005_v9 }
 0x2d1   :  { %v959_v63 = vrot.slane %v952_v24, %v8656_v61  ;;  %v10081_v24 = vld [vmem:[#allocation24_spill] sm:$0xff] }
 0x2d2   :  { %v9009_v25 = vpop.permute.xlu0 %872 }
 0x2d3   :  { %v9011_v6 = vpop.permute.xlu1 %894 }
 0x2d6   :  { %v9013_v58 = vpop.permute.xlu0 %876 }
 0x2d7   :  { %10078 = vst [vmem:[#allocation65_spill] sm:$0xff] %v9013_v58  ;;  %v9015_v41 = vpop.permute.xlu1 %898 }
 0x2da   :  { %v9017_v10 = vpop.permute.xlu0 %888 }
 0x2db   :  { %v9019_v34 = vpop.permute.xlu1 %902 }
 0x2de   :  { %v9023_v46 = vpop.permute.xlu0 %892 }
 0x2df   :  { %v9025_v7 = vpop.permute.xlu1 %914 }
 0x2e0   :  { %v960_v8 = vcombine.low %v9007_v56, %v9025_v7 }
 0x2e2   :  { %v967_v13 = vrot.slane %v960_v8, %v8656_v61  ;;  %v9031_v38 = vpop.permute.xlu0 %896  ;;  %v8000_v8 = vrot.slane %v8649_v57, 9  ;;  %v8002_v57 = vrot.slane %v10081_v24, 9 }
 0x2e3   :  { %v9034_v36 = vpop.permute.xlu1 %918 }
 0x2e4   :  { %v2381_v42 = vcombine.low %v959_v63, %v967_v13  ;;  %v8001_v63 = vrot.slane %v8653_v60, 9  ;;  %v7991_v13 = vrot.slane %v8623_v52, 9  ;;  %v992_v40 = vcombine.low %v9011_v6, %v9034_v36 }
 0x2e6   :  { %v9039_v55 = vpop.permute.xlu0 %900  ;;  %v2388_v49 = vrot.slane %v2381_v42, %v8474_v18  ;;  %v7994_v42 = vrot.slane %v10080_v17, 9  ;;  %v10082_v17 = vld [vmem:[#allocation53_spill] sm:$0xff]  ;;  %v4147_v39 = vcombine.low %v8001_v63, %v8002_v57 }
 0x2e7   :  { %10079 = vst [vmem:[#allocation66_spill] sm:$0xff] %v9039_v55  ;;  %v9043_v51 = vpop.permute.xlu1 %922  ;;  %v7992_v62 = vrot.slane %v10082_v17, 9  ;;  %v10085_v57 = vld [vmem:[#allocation33_spill] sm:$0xff] }
 0x2e8   :  { %v1024_v29 = vcombine.low %v9015_v41, %v9043_v51  ;;  %2477 = vxpose.xlu1.b32.start.end [1/1] (short) (narrow) %v2388_v49, 8  ;;  %v4115_v19 = vcombine.low %v7993_v4, %v7994_v42  ;;  %v4066_v42 = vrot.slane %v4059_v1, %v8656_v61  ;;  %v8008_v2 = vrot.slane %v10085_v57, 9 }
 0x2e9   :  { %v4107_v27 = vcombine.low %v7991_v13, %v7992_v62 }
 0x2ea   :  { %v9058_v32 = vpop.permute.xlu0 %912  ;;  %v1031_v49 = vrot.slane %v1024_v29, %v8656_v61  ;;  %v943_v29 = vrot.slane %v936_v22, %v8656_v61  ;;  %v984_v22 = vcombine.low %v8842_v37, %v8993_v16  ;;  %v4499_v63 = vcombine.low %v4066_v42, %v4074_v50 }
 0x2eb   :  { %v944_v52 = vcombine.low %v9017_v10, %v9058_v32  ;;  %v9065_v60 = vpop.permute.xlu1 %926  ;;  %v4122_v62 = vrot.slane %v4115_v19, %v8656_v61  ;;  %v4114_v50 = vrot.slane %v4107_v27, %v8656_v61  ;;  %v10088_v19 = vld [vmem:[#allocation14_spill] sm:$0xff]  ;;  %v1032_v27 = vcombine.low %v8845_v28, %v9013_v58 }
 0x2ec   :  { %v1056_v20 = vcombine.low %v9019_v34, %v9065_v60  ;;  %v2413_v33 = vcombine.low %v1023_v45, %v1031_v49  ;;  %v4139_v45 = vcombine.low %v7999_v53, %v8000_v8  ;;  %v999_v53 = vrot.slane %v992_v40, %v8656_v61  ;;  %v10084_v8 = vld [vmem:[#allocation39_spill] sm:$0xff]  ;;  %v10086_v40 = vld [vmem:[#allocation36_spill] sm:$0xff] }
 0x2ed   :  { %v951_v24 = vrot.slane %v944_v52, %v8656_v61  ;;  %v991_v13 = vrot.slane %v984_v22, %v8656_v61  ;;  %v4523_v57 = vcombine.low %v4114_v50, %v4122_v62  ;;  %v10093_v62 = vld [vmem:[#allocation54_spill] sm:$0xff] }
 0x2ee   :  { %v9078_v3 = vpop.permute.xlu0 %916  ;;  %v2420_v17 = vrot.slane %v2413_v33, %v8474_v18  ;;  %v1063_v15 = vrot.slane %v1056_v20, %v8656_v61  ;;  %v8010_v33 = vrot.slane %v10084_v8, 9 }
 0x2ef   :  { %v976_v49 = vcombine.low %v9023_v46, %v9078_v3  ;;  %v2373_v11 = vcombine.low %v943_v29, %v951_v24  ;;  %v8009_v24 = vrot.slane %v10086_v40, 9  ;;  %v2397_v42 = vcombine.low %v991_v13, %v999_v53  ;;  %v10090_v40 = vld [vmem:[#allocation37_spill] sm:$0xff] }
 0x2f0   :  { %2605 = vxpose.xlu1.b32.start.end [1/1] (short) (narrow) %v2420_v17, 8  ;;  %v2429_v4 = vcombine.low %v1055_v44, %v1063_v15  ;;  %v1000_v15 = vcombine.low %v8836_v30, %v9009_v25  ;;  %v10087_v17 = vld [vmem:[#allocation50_spill] sm:$0xff] }
 0x2f1   :  { %v2380_v52 = vrot.slane %v2373_v11, %v8474_v18  ;;  %v983_v20 = vrot.slane %v976_v49, %v8656_v61  ;;  %v7984_v44 = vrot.slane %v10087_v17, 9  ;;  %v7983_v49 = vrot.slane %v10088_v19, 9 }
 0x2f2   :  { %v9093_v5 = vpop.permute.xlu0 %920  ;;  %v2436_v29 = vrot.slane %v2429_v4, %v8474_v18  ;;  %v7986_v17 = vrot.slane %v10090_v40, 9  ;;  %v1007_v53 = vrot.slane %v1000_v15, %v8656_v61  ;;  %v2404_v50 = vrot.slane %v2397_v42, %v8474_v18 }
 0x2f3   :  { %v1008_v11 = vcombine.low %v9031_v38, %v9093_v5  ;;  %2445 = vxpose.xlu0.b32.start.end [1/1] (short) (narrow) %v2380_v52, 8  ;;  %v2389_v1 = vcombine.low %v975_v23, %v983_v20  ;;  %v4154_v52 = vrot.slane %v4147_v39, %v8656_v61  ;;  %v4179_v23 = vcombine.low %v8009_v24, %v8010_v33 }
 0x2f4   :  { %2669 = vxpose.xlu1.b32.start.end [1/1] (short) (narrow) %v2436_v29, 8  ;;  %v4506_v20 = vrot.slane %v4499_v63, %v8474_v18  ;;  %v10091_v39 = vrot.slane %v8534_v35, 9  ;;  %v4075_v63 = vcombine.low %v7983_v49, %v7984_v44  ;;  %v7990_v24 = vrot.slane %v10093_v62, 9  ;;  %v10096_v49 = vld [vmem:[#allocation23_spill] sm:$0xff]  ;;  %v10099_v62 = vld [vmem:[#allocation21_spill] sm:$0xff] }
 0x2f5   :  { %v2396_v4 = vrot.slane %v2389_v1, %v8474_v18  ;;  %v1015_v8 = vrot.slane %v1008_v11, %v8656_v61  ;;  %v4146_v11 = vrot.slane %v4139_v45, %v8656_v61  ;;  %v10092_v1 = vld [vmem:[#allocation34_spill] sm:$0xff]  ;;  %v4530_v15 = vrot.slane %v4523_v57, %v8474_v18  ;;  %v10094_v45 = vld [vmem:[#allocation31_spill] sm:$0xff] }
 0x2f6   :  { %v9110_v22 = vpop.permute.xlu0 %924  ;;  %v4171_v33 = vcombine.low %v10091_v39, %v8008_v2  ;;  %v7985_v13 = vrot.slane %v10092_v1, 9  ;;  %v7988_v43 = vrot.slane %v10094_v45, 9  ;;  %v10095_v2 = vld [vmem:[#allocation52_spill] sm:$0xff]  ;;  %v1039_v44 = vrot.slane %v1032_v27, %v8656_v61  ;;  %v10097_v1 = vld [vmem:[#allocation13_spill] sm:$0xff] }
 0x2f7   :  { %10089 = vst [vmem:[#allocation56_spill] sm:$0xff] %v9110_v22  ;;  %v1040_v29 = vcombine.low %v9039_v55, %v9110_v22  ;;  %2509 = vxpose.xlu0.b32.start.end [1/1] (short) (narrow) %v2396_v4, 8  ;;  %v2405_v19 = vcombine.low %v1007_v53, %v1015_v8  ;;  %v4186_v4 = vrot.slane %v4179_v23, %v8656_v61  ;;  %v7989_v39 = vrot.slane %v10095_v2, 9  ;;  %v10098_v53 = vld [vmem:[#allocation22_spill] sm:$0xff]  ;;  %v10100_v2 = vld [vmem:[#allocation9_spill] sm:$0xff] }
 0x2f8   :  { %4571 = vxpose.xlu1.b32.start.end [1/1] (short) (narrow) %v4506_v20, 8  ;;  %v4539_v26 = vcombine.low %v4146_v11, %v4154_v52  ;;  %v4083_v35 = vcombine.low %v7985_v13, %v7986_v17  ;;  %v7998_v20 = vrot.slane %v10096_v49, 9  ;;  %v7987_v42 = vrot.slane %v10097_v1, 9 }
 0x2f9   :  { %v1047_v40 = vrot.slane %v1040_v29, %v8656_v61  ;;  %v4178_v8 = vrot.slane %v4171_v33, %v8656_v61  ;;  %v4082_v23 = vrot.slane %v4075_v63, %v8656_v61  ;;  %v4099_v29 = vcombine.low %v7989_v39, %v7990_v24  ;;  %v10101_v63 = vld [vmem:[#allocation38_spill] sm:$0xff] }
 0x2fa   :  { %v2412_v52 = vrot.slane %v2405_v19, %v8474_v18  ;;  %v7997_v17 = vrot.slane %v10098_v53, 9  ;;  %v4546_v11 = vrot.slane %v4539_v26, %v8474_v18  ;;  %v7996_v27 = vrot.slane %v10099_v62, 9 }
 0x2fb   :  { %2541 = vxpose.xlu0.b32.start.end [1/1] (short) (narrow) %v2404_v50, 8  ;;  %v2421_v57 = vcombine.low %v1039_v44, %v1047_v40  ;;  %v4555_v13 = vcombine.low %v4178_v8, %v4186_v4  ;;  %v4091_v50 = vcombine.low %v7987_v42, %v7988_v43  ;;  %v4090_v45 = vrot.slane %v4083_v35, %v8656_v61  ;;  %v10102_v43 = vld [vmem:[#allocation32_spill] sm:$0xff]  ;;  %v10103_v35 = vld [vmem:[#allocation35_spill] sm:$0xff] }
 0x2fc   :  { %4667 = vxpose.xlu1.b32.start.end [1/1] (short) (narrow) %v4530_v15, 8  ;;  %v7995_v33 = vrot.slane %v10100_v2, 9  ;;  %v4131_v15 = vcombine.low %v7997_v17, %v7998_v20  ;;  %v8006_v24 = vrot.slane %v10101_v63, 9  ;;  %v4106_v19 = vrot.slane %v4099_v29, %v8656_v61  ;;  %v10104_v42 = vld [vmem:[#allocation12_spill] sm:$0xff] }
 0x2fd   :  { %v2428_v40 = vrot.slane %v2421_v57, %v8474_v18  ;;  %v4507_v39 = vcombine.low %v4082_v23, %v4090_v45  ;;  %v4562_v26 = vrot.slane %v4555_v13, %v8474_v18  ;;  %v4098_v44 = vrot.slane %v4091_v50, %v8656_v61 }
 0x2fe   :  { %v4123_v4 = vcombine.low %v7995_v33, %v7996_v27  ;;  %v8004_v49 = vrot.slane %v10102_v43, 9  ;;  %v8005_v1 = vrot.slane %v10103_v35, 9  ;;  %v8003_v20 = vrot.slane %v10104_v42, 9 }
 0x2ff   :  { %2573 = vxpose.xlu0.b32.start.end [1/1] (short) (narrow) %v2412_v52, 8  ;;  %v4138_v8 = vrot.slane %v4131_v15, %v8656_v61  ;;  %v4514_v29 = vrot.slane %v4507_v39, %v8474_v18  ;;  %v4515_v57 = vcombine.low %v4098_v44, %v4106_v19 }
 0x300   :  { %4731 = vxpose.xlu1.b32.start.end [1/1] (short) (narrow) %v4546_v11, 8  ;;  %v4163_v52 = vcombine.low %v8005_v1, %v8006_v24  ;;  %v4130_v23 = vrot.slane %v4123_v4, %v8656_v61  ;;  %v4155_v53 = vcombine.low %v8003_v20, %v8004_v49 }
 0x301   :  { %v4522_v11 = vrot.slane %v4515_v57, %v8474_v18 }
 0x302   :  { %v4170_v17 = vrot.slane %v4163_v52, %v8656_v61  ;;  %v4531_v13 = vcombine.low %v4130_v23, %v4138_v8  ;;  %v4162_v62 = vrot.slane %v4155_v53, %v8656_v61 }
 0x303   :  { %2637 = vxpose.xlu0.b32.start.end [1/1] (short) (narrow) %v2428_v40, 8 }
 0x304   :  { %4795 = vxpose.xlu1.b32.start.end [1/1] (short) (narrow) %v4562_v26, 8  ;;  %v4538_v27 = vrot.slane %v4531_v13, %v8474_v18  ;;  %v4547_v50 = vcombine.low %v4162_v62, %v4170_v17 }
 0x306   :  { %v4554_v45 = vrot.slane %v4547_v50, %v8474_v18 }
 0x307   :  { %4603 = vxpose.xlu0.b32.start.end [1/1] (short) (narrow) %v4514_v29, 8 }
 0x30b   :  { %4635 = vxpose.xlu0.b32.start.end [1/1] (short) (narrow) %v4522_v11, 8 }
 0x30f   :  { %4699 = vxpose.xlu0.b32.start.end [1/1] (short) (narrow) %v4538_v27, 8 }
 0x313   :  { %4763 = vxpose.xlu0.b32.start.end [1/1] (short) (narrow) %v4554_v45, 8 }
 0x364   :  { %v2493_v2 = vpop.trf.xlu1 }
 0x36c   :  { %v2621_v33 = vpop.trf.xlu1 }
 0x36f   :  { %v2461_v15 = vpop.trf.xlu0 }
 0x370   :  { %v2685_v24 = vpop.trf.xlu1 }
 0x371   :  { %v2749_v35 = vcombine.low %v2621_v33, %v2685_v24  ;;  %v2750_v57 = vcombine.high %v2621_v33, %v2685_v24 }
 0x373   :  { %v2525_v63 = vpop.trf.xlu0  ;;  %v2757_v11 = vrot.slane %v2749_v35, %v8474_v18 }
 0x374   :  { %v9157_v40 = vpop.trf.xlu1  ;;  %v2701_v44 = vcombine.low %v2461_v15, %v2525_v63  ;;  %v2702_v62 = vcombine.high %v2461_v15, %v2525_v63 }
 0x376   :  { %v2709_v8 = vrot.slane %v2701_v44, %v8474_v18  ;;  %v2764_v44 = vrot.slane %v2750_v57, %v8474_v18  ;;  %v2716_v15 = vrot.slane %v2702_v62, %v8474_v18 }
 0x377   :  { %v2557_v19 = vpop.trf.xlu0 }
 0x378   :  { %v2717_v39 = vcombine.low %v2493_v2, %v2557_v19  ;;  %v9162_v1 = vpop.trf.xlu1  ;;  %v2718_v53 = vcombine.high %v2493_v2, %v2557_v19 }
 0x37a   :  { %v2725_v49 = vrot.slane %v2717_v39, %v8474_v18  ;;  %v2732_v33 = vrot.slane %v2718_v53, %v8474_v18 }
 0x37b   :  { %v9159_v26 = vpop.f32.mrf.mxu1  ;;  %v2589_v4 = vpop.trf.xlu0 }
 0x37c   :  { %v2765_v17 = vcombine.low %v2709_v8, %v2725_v49  ;;  %v4747_v28 = vpop.trf.xlu1  ;;  %v2766_v2 = vcombine.high %v2709_v8, %v2725_v49 }
 0x37d   :  { %v8161_v43 = vpop.f32.mrf.mxu1 }
 0x37e   :  { %v2773_v24 = vrot.slane %v2765_v17, %v8656_v61  ;;  %v2780_v49 = vrot.slane %v2766_v2, %v8656_v61 }
 0x37f   :  { %v9164_v42 = vpop.f32.mrf.mxu1  ;;  %v2653_v20 = vpop.trf.xlu0 }
 0x380   :  { %v2733_v52 = vcombine.low %v2589_v4, %v2653_v20  ;;  %v2734_v29 = vcombine.high %v2589_v4, %v2653_v20  ;;  %v4811_v53 = vpop.trf.xlu1 }
 0x381   :  { %v8166_v23 = vpop.f32.mrf.mxu1 }
 0x382   :  { %v2741_v13 = vrot.slane %v2733_v52, %v8474_v18  ;;  %v2748_v45 = vrot.slane %v2734_v29, %v8474_v18 }
 0x383   :  { %v9169_v27 = vpop.f32.mrf.mxu1  ;;  %v4619_v50 = vpop.trf.xlu0 }
 0x384   :  { %v2797_v39 = vcombine.low %v2741_v13, %v2757_v11  ;;  %v2798_v43 = vcombine.high %v2741_v13, %v2757_v11  ;;  %v4844_v20 = vcombine.high %v4619_v50, %v9162_v1  ;;  %v2813_v52 = vcombine.low %v2748_v45, %v2764_v44 }
 0x385   :  { %v8171_v4 = vpop.f32.mrf.mxu1  ;;  %v2781_v13 = vcombine.low %v2716_v15, %v2732_v33  ;;  %v2814_v17 = vcombine.high %v2748_v45, %v2764_v44 }
 0x386   :  { %v2805_v19 = vrot.slane %v2797_v39, %v8656_v61  ;;  %v2812_v57 = vrot.slane %v2798_v43, %v8656_v61  ;;  %v4858_v62 = vrot.slane %v4844_v20, %v8474_v18  ;;  %v4876_v4 = vcombine.high %v4747_v28, %v4811_v53 }
 0x387   :  { %v9177_v63 = vpop.f32.mrf.mxu1  ;;  %v4651_v35 = vpop.trf.xlu0  ;;  %v2828_v20 = vrot.slane %v2814_v17, %v8656_v61 }
 0x388   :  { %v2830_v29 = vcombine.high %v2773_v24, %v2805_v19  ;;  %v2829_v23 = vcombine.low %v2773_v24, %v2805_v19  ;;  %v4828_v8 = vcombine.high %v9157_v40, %v4651_v35  ;;  %v2832_v55 = vcombine.high %v2780_v49, %v2812_v57 }
 0x389   :  { %v8176_v11 = vpop.f32.mrf.mxu1  ;;  %v2831_v58 = vcombine.low %v2780_v49, %v2812_v57  ;;  %v2821_v24 = vrot.slane %v2813_v52, %v8656_v61  ;;  %v2782_v19 = vcombine.high %v2716_v15, %v2732_v33  ;;  %v4843_v15 = vcombine.low %v4619_v50, %v9162_v1 }
 0x38a   :  { %2869 = vxpose.xlu1.b32.start.end [1/1] (short) (narrow) %v2830_v29, 8  ;;  %2837 = vxpose.xlu0.b32.start.end [1/1] (short) (narrow) %v2829_v23, 8  ;;  %v4842_v43 = vrot.slane %v4828_v8, %v8474_v18  ;;  %v2789_v29 = vrot.slane %v2781_v13, %v8656_v61  ;;  %v4890_v11 = vrot.slane %v4876_v4, %v8474_v18 }
 0x38b   :  { %v4715_v39 = vpop.trf.xlu0  ;;  %v2796_v52 = vrot.slane %v2782_v19, %v8656_v61  ;;  %v4875_v13 = vcombine.low %v4747_v28, %v4811_v53  ;;  %v4827_v49 = vcombine.low %v9157_v40, %v4651_v35  ;;  %v4851_v17 = vrot.slane %v4843_v15, %v8474_v18 }
 0x38c   :  { %v4908_v2 = vcombine.high %v4842_v43, %v4858_v62  ;;  %v2834_v45 = vcombine.high %v2789_v29, %v2821_v24  ;;  %v2833_v44 = vcombine.low %v2789_v29, %v2821_v24  ;;  %v4907_v19 = vcombine.low %v4842_v43, %v4858_v62 }
 0x38d   :  { %v2836_v33 = vcombine.high %v2796_v52, %v2828_v20  ;;  %v4883_v4 = vrot.slane %v4875_v13, %v8474_v18  ;;  %v4835_v24 = vrot.slane %v4827_v49, %v8474_v18 }
 0x38e   :  { %2933 = vxpose.xlu1.b32.start.end [1/1] (short) (narrow) %v2832_v55, 8  ;;  %2901 = vxpose.xlu0.b32.start.end [1/1] (short) (narrow) %v2831_v58, 8  ;;  %v2835_v55 = vcombine.low %v2796_v52, %v2828_v20  ;;  %v9198_v20 = vrot.slane %v4907_v19, %v8656_v61  ;;  %v9210_v50 = vrot.slane %v4908_v2, %v8656_v61  ;;  %v2319_v2 = vsel %vm1961_vm2, %v9169_v27, -inf }
 0x38f   :  { %v4779_v23 = vpop.trf.xlu0  ;;  %v2322_v52 = vsel %vm1961_vm2, %v9177_v63, -inf }
 0x390   :  { %v4860_v22 = vcombine.high %v4715_v39, %v4779_v23  ;;  %v4859_v8 = vcombine.low %v4715_v39, %v4779_v23  ;;  %v2316_v23 = vsel %vm1961_vm2, %v9164_v42, -inf }
 0x392   :  { %2997 = vxpose.xlu1.b32.start.end [1/1] (short) (narrow) %v2834_v45, 8  ;;  %2965 = vxpose.xlu0.b32.start.end [1/1] (short) (narrow) %v2833_v44, 8  ;;  %v4874_v57 = vrot.slane %v4860_v22, %v8474_v18  ;;  %v4867_v22 = vrot.slane %v4859_v8, %v8474_v18  ;;  %v4892_v45 = vcombine.high %v4835_v24, %v4851_v17 }
 0x394   :  { %v4940_v58 = vcombine.high %v4874_v57, %v4890_v11  ;;  %v4939_v29 = vcombine.low %v4874_v57, %v4890_v11  ;;  %v4924_v44 = vcombine.high %v4867_v22, %v4883_v4  ;;  %v9204_v40 = vrot.slane %v4892_v45, %v8656_v61 }
 0x395   :  { %v2313_v11 = vsel %vm1961_vm2, %v9159_v26, -inf  ;;  %v4891_v57 = vcombine.low %v4835_v24, %v4851_v17 }
 0x396   :  { %3061 = vxpose.xlu1.b32.start.end [1/1] (short) (narrow) %v2836_v33, 8  ;;  %3029 = vxpose.xlu0.b32.start.end [1/1] (short) (narrow) %v2835_v55, 8  ;;  %v9201_v28 = vrot.slane %v4939_v29, %v8656_v61  ;;  %v9207_v1 = vrot.slane %v4924_v44, %v8656_v61  ;;  %v9213_v35 = vrot.slane %v4940_v58, %v8656_v61 }
 0x397   :  { %v4923_v33 = vcombine.low %v4867_v22, %v4883_v4  ;;  %v4899_v55 = vrot.slane %v4891_v57, %v8656_v61 }
 0x398   :  { %v4957_v53 = vcombine.low %v9204_v40, %v9207_v1  ;;  %v4959_v62 = vcombine.low %v9198_v20, %v9201_v28  ;;  %v4962_v39 = vcombine.high %v9210_v50, %v9213_v35  ;;  %v4958_v49 = vcombine.high %v9204_v40, %v9207_v1 }
 0x399   :  { %v4931_v58 = vrot.slane %v4923_v33, %v8656_v61  ;;  %v4960_v8 = vcombine.high %v9198_v20, %v9201_v28  ;;  %v8028_v40 = vrot.slane %v9009_v25, 9  ;;  %v8029_v1 = vrot.slane %v9031_v38, 9 }
 0x39b   :  { %v4956_v15 = vcombine.high %v4899_v55, %v4931_v58  ;;  %v4955_v13 = vcombine.low %v4899_v55, %v4931_v58 }
 0x3bd   :  { %2317 = vmax.xlane.f32.xlu1 %v2316_v23 }
 0x3c1   :  { %2320 = vmax.xlane.f32.xlu1 %v2319_v2 }
 0x3c3   :  { %2314 = vmax.xlane.f32.xlu0 %v2313_v11 }
 0x3c7   :  { %2323 = vmax.xlane.f32.xlu0 %v2322_v52 }
 0x3f4   :  { %4995 = vxpose.xlu1.b32.start.end [1/1] (short) (narrow) %v4956_v15, 8  ;;  %4963 = vxpose.xlu0.b32.start.end [1/1] (short) (narrow) %v4955_v13, 8 }
 0x3f8   :  { %5059 = vxpose.xlu1.b32.start.end [1/1] (short) (narrow) %v4958_v49, 8 }
 0x3fc   :  { %5123 = vxpose.xlu1.b32.start.end [1/1] (short) (narrow) %v4960_v8, 8 }
 0x406   :  { %v9237_v19 = vpop.trf.xlu0  ;;  %v9247_v29 = vpop.trf.xlu1 }
 0x40a   :  { %v9239_v17 = vpop.trf.xlu0  ;;  %v9249_v45 = vpop.trf.xlu1 }
 0x40e   :  { %v9241_v4 = vpop.trf.xlu0  ;;  %v9251_v44 = vpop.trf.xlu1 }
 0x412   :  { %v9243_v24 = vpop.trf.xlu0  ;;  %v9253_v23 = vpop.trf.xlu1 }
 0x446   :  { %v2318_v2 = vpop.xlane.xlu1 %2317 }
 0x447   :  { %v2326_v11 = vsub.f32 %v9164_v42, %v2318_v2 }
 0x449   :  { %v2331_v52 = vmul.f32 1.442695, %v2326_v11 }
 0x44a   :  { %v2321_v57 = vpop.xlane.xlu1 %2320 }
 0x44b   :  { %8272 = vpow2.f32 %v2331_v52  ;;  %v2327_v33 = vsub.f32 %v9169_v27, %v2321_v57  ;;  %v8014_v52 = vrot.slane %v9058_v32, 9  ;;  %v8012_v57 = vrot.slane %v8976_v12, 9 }
 0x44c   :  { %v2315_v55 = vpop.xlane.xlu0 %2314  ;;  %v8015_v32 = vrot.slane %v8863_v59, 9  ;;  %v8027_v12 = vrot.slane %v8836_v30, 9  ;;  %v8034_v59 = vrot.slane %v9043_v51, 9  ;;  %v8030_v51 = vrot.slane %v9093_v5, 9 }
 0x44d   :  { %v2325_v58 = vsub.f32 %v9159_v26, %v2315_v55  ;;  %v2333_v15 = vmul.f32 1.442695, %v2327_v33  ;;  %v8013_v33 = vrot.slane %v9017_v10, 9  ;;  %v8018_v55 = vrot.slane %v9025_v7, 9 }
 0x44e   :  { %v8019_v10 = vrot.slane %v8831_v21, 9  ;;  %v8025_v7 = vrot.slane %v9011_v6, 9  ;;  %v4355_v38 = vcombine.low %v8029_v1, %v8030_v51  ;;  %v4347_v28 = vcombine.low %v8027_v12, %v8028_v40 }
 0x44f   :  { %v2329_v13 = vmul.f32 1.442695, %v2325_v58  ;;  %v8011_v58 = vrot.slane %v8828_v0, 9  ;;  %v8022_v0 = vrot.slane %v9078_v3, 9 }
 0x450   :  { %v2324_v49 = vpop.xlane.xlu0 %2323  ;;  %v4362_v12 = vrot.slane %v4355_v38, %v8656_v61 }
 0x451   :  { %8274 = vpow2.f32 %v2329_v13  ;;  %v2328_v8 = vsub.f32 %v9177_v63, %v2324_v49  ;;  %v8017_v13 = vrot.slane %v9007_v56, 9  ;;  %v8026_v49 = vrot.slane %v9034_v36, 9 }
 0x452   :  { %8276 = vpow2.f32 %v2333_v15  ;;  %v8016_v15 = vrot.slane %v9005_v9, 9  ;;  %v8020_v9 = vrot.slane %v8985_v31, 9  ;;  %v8023_v56 = vrot.slane %v8842_v37, 9 }
 0x453   :  { %v2335_v22 = vmul.f32 1.442695, %v2328_v8  ;;  %v4291_v8 = vcombine.low %v8013_v33, %v8014_v52  ;;  %v8031_v36 = vrot.slane %v8851_v48, 9  ;;  %v4339_v52 = vcombine.low %v8025_v7, %v8026_v49 }
 0x454   :  { %v8032_v31 = vrot.slane %v8999_v54, 9  ;;  %v8039_v37 = vrot.slane %v8857_v14, 9  ;;  %v8033_v48 = vrot.slane %v9015_v41, 9  ;;  %v8042_v54 = vrot.slane %v9065_v60, 9 }
 0x455   :  { %8278 = vpow2.f32 %v2335_v22  ;;  %v4298_v30 = vrot.slane %v4291_v8, %v8656_v61 }
 0x456   :  { %v4363_v5 = vcombine.low %v8031_v36, %v8032_v31 }
 0x458   :  { %v9259_v43 = vpop.eup %8272 }
 0x459   :  { %v2340_v42 = vsel %vm1961_vm2, %v9259_v43, 0.0 }
 0x45a   :  { %2341 = vadd.xlane.f32.xlu1 %v2340_v42  ;;  %v4283_v42 = vcombine.low %v8011_v58, %v8012_v57  ;;  %v4315_v57 = vcombine.low %v8019_v10, %v8020_v9  ;;  %v8040_v58 = vrot.slane %v9003_v47, 9 }
 0x45c   :  { %v4290_v21 = vrot.slane %v4283_v42, %v8656_v61  ;;  %v4322_v20 = vrot.slane %v4315_v57, %v8656_v61  ;;  %v10107_v42 = vld [vmem:[#allocation66_spill] sm:$0xff] }
 0x45e   :  { %v9263_v2 = vpop.eup %8274  ;;  %v5719_v14 = vcombine.low %v4290_v21, %v4298_v30 }
 0x45f   :  { %v2337_v26 = vsel %vm1961_vm2, %v9263_v2, 0.0  ;;  %v9267_v27 = vpop.eup %8276 }
 0x460   :  { %2338 = vadd.xlane.f32.xlu0 %v2337_v26  ;;  %v2343_v22 = vsel %vm1961_vm2, %v9267_v27, 0.0  ;;  %v8024_v26 = vrot.slane %v8993_v16, 9  ;;  %v8021_v16 = vrot.slane %v9023_v46, 9  ;;  %v5726_v10 = vrot.slane %v5719_v14, %v8474_v18 }
 0x461   :  { %v3093_v14 = vcombine.low %v9237_v19, %v9239_v17 }
 0x462   :  { %v9269_v11 = vpop.eup %8278  ;;  %v4331_v6 = vcombine.low %v8023_v56, %v8024_v26  ;;  %v4323_v3 = vcombine.low %v8021_v16, %v8022_v0  ;;  %v8037_v26 = vrot.slane %v10107_v42, 9  ;;  %v10109_v0 = vld [vmem:[#allocation62_spill] sm:$0xff]  ;;  %v4354_v16 = vrot.slane %v4347_v28, %v8656_v61 }
 0x463   :  { %v2346_v63 = vsel %vm1961_vm2, %v9269_v11, 0.0  ;;  %v8035_v9 = vrot.slane %v10109_v0, 9  ;;  %v10113_v0 = vld [vmem:[#allocation10_spill] sm:$0xff] }
 0x464   :  { %2347 = vadd.xlane.f32.xlu1 %v2346_v63  ;;  %2344 = vadd.xlane.f32.xlu0 %v2343_v22  ;;  %v4307_v63 = vcombine.low %v8017_v13, %v8018_v55  ;;  %v4299_v22 = vcombine.low %v8015_v32, %v8016_v15  ;;  %v4371_v55 = vcombine.low %v8033_v48, %v8034_v59  ;;  %v8041_v15 = vrot.slane %v9019_v34, 9  ;;  %v10105_v13 = vld [vmem:[#allocation56_spill] sm:$0xff] }
 0x465   :  { %v4338_v41 = vrot.slane %v4331_v6, %v8656_v61  ;;  %v4330_v25 = vrot.slane %v4323_v3, %v8656_v61  ;;  %v8038_v49 = vrot.slane %v10105_v13, 9  ;;  %v10108_v32 = vcombine.low %v9210_v50, %v9213_v35 }
 0x466   :  { %v4314_v46 = vrot.slane %v4307_v63, %v8656_v61  ;;  %v4306_v33 = vrot.slane %v4299_v22, %v8656_v61  ;;  %v4378_v47 = vrot.slane %v4371_v55, %v8656_v61  ;;  %v4403_v34 = vcombine.low %v8041_v15, %v8042_v54 }
 0x467   :  { %v4395_v63 = vcombine.low %v8039_v37, %v8040_v58  ;;  %v4387_v56 = vcombine.low %v8037_v26, %v8038_v49  ;;  %v5735_v22 = vcombine.low %v4322_v20, %v4330_v25  ;;  %v5751_v31 = vcombine.low %v4354_v16, %v4362_v12  ;;  %v10115_v16 = vld [vmem:[#allocation11_spill] sm:$0xff] }
 0x468   :  { %v5727_v60 = vcombine.low %v4306_v33, %v4314_v46  ;;  %v4410_v50 = vrot.slane %v4403_v34, %v8656_v61  ;;  %v3100_v58 = vrot.slane %v3093_v14, %v8474_v18  ;;  %v10110_v25 = vcombine.low %v9241_v4, %v9243_v24 }
 0x469   :  { %v4402_v30 = vrot.slane %v4395_v63, %v8656_v61  ;;  %v4394_v21 = vrot.slane %v4387_v56, %v8656_v61  ;;  %v5742_v6 = vrot.slane %v5735_v22, %v8474_v18  ;;  %v5758_v3 = vrot.slane %v5751_v31, %v8474_v18  ;;  %v10119_v31 = vld [vmem:[#allocation17_spill] sm:$0xff] }
 0x46a   :  { %v5734_v36 = vrot.slane %v5727_v60, %v8474_v18  ;;  %v3116_v38 = vrot.slane %v10110_v25, %v8474_v18  ;;  %v10111_v24 = vmov 0.0  }
 0x46b   :  { %v5775_v46 = vcombine.low %v4402_v30, %v4410_v50  ;;  %v10116_v50 = vld [vmem:[#allocation15_spill] sm:$0xff] }
 0x46d   :  { %v5782_v57 = vrot.slane %v5775_v46, %v8474_v18 }
 0x470   :  { %v9343_v40 = vpop.trf.xlu1  ;;  %v9349_v54 = vpop.trf.xlu0 }
 0x474   :  { %v9345_v1 = vpop.trf.xlu1 }
 0x491   :  { %5027 = vxpose.xlu0.b32.start.end [1/1] (short) (narrow) %v4957_v53, 8  ;;  %v4346_v53 = vrot.slane %v4339_v52, %v8656_v61 }
 0x493   :  { %v5743_v7 = vcombine.low %v4338_v41, %v4346_v53  ;;  %v9347_v53 = vpop.trf.xlu1  ;;  %v3101_v41 = vcombine.low %v9247_v29, %v9249_v45 }
 0x495   :  { %5091 = vxpose.xlu0.b32.start.end [1/1] (short) (narrow) %v4959_v62, 8  ;;  %v10106_v62 = vld [vmem:[#allocation65_spill] sm:$0xff]  ;;  %v5750_v35 = vrot.slane %v5743_v7, %v8474_v18  ;;  %v3108_v15 = vrot.slane %v3101_v41, %v8474_v18 }
 0x496   :  { %v8036_v8 = vrot.slane %v10106_v62, 9 }
 0x497   :  { %5187 = vxpose.xlu1.b32.start.end [1/1] (short) (narrow) %v4962_v39, 8  ;;  %v4370_v39 = vrot.slane %v4363_v5, %v8656_v61  ;;  %v3117_v5 = vcombine.low %v9251_v44, %v9253_v23  ;;  %v3125_v19 = vcombine.low %v3100_v58, %v3108_v15  ;;  %v3126_v62 = vcombine.high %v3100_v58, %v3108_v15  ;;  %v10124_v15 = vld [vmem:[#allocation41_spill] sm:$0xff] }
 0x498   :  { %v4379_v52 = vcombine.low %v8035_v9, %v8036_v8  ;;  %v7963_v9 = vrot.slane %v10113_v0, 9  ;;  %v7952_v25 = vrot.slane %v10124_v15, 9 }
 0x499   :  { %5155 = vxpose.xlu0.b32.start.end [1/1] (short) (narrow) %v10108_v32, 8  ;;  %v5759_v59 = vcombine.low %v4370_v39, %v4378_v47  ;;  %v3124_v13 = vrot.slane %v3117_v5, %v8474_v18  ;;  %v3133_v44 = vrot.slane %v3125_v19, %v8656_v61  ;;  %v3140_v47 = vrot.slane %v3126_v62, %v8656_v61  ;;  %v10123_v5 = vld [vmem:[#allocation40_spill] sm:$0xff] }
 0x49a   :  { %v4386_v37 = vrot.slane %v4379_v52, %v8656_v61  ;;  %v7967_v52 = vrot.slane %v10115_v16, 9  ;;  %v7948_v58 = vrot.slane %v10123_v5, 9  ;;  %v10136_v16 = vld [vmem:[#allocation51_spill] sm:$0xff] }
 0x49b   :  { %5791 = vxpose.xlu1.b32.start.end [1/1] (short) (narrow) %v5726_v10, 8  ;;  %v5766_v48 = vrot.slane %v5759_v59, %v8474_v18  ;;  %v3141_v17 = vcombine.low %v3116_v38, %v3124_v13  ;;  %v3142_v8 = vcombine.high %v3116_v38, %v3124_v13  ;;  %v10112_v10 = vlaneseq  ;;  %v10125_v38 = vld [vmem:[#allocation43_spill] sm:$0xff] }
 0x49c   :  { %v5767_v51 = vcombine.low %v4386_v37, %v4394_v21  ;;  %v10118_v21 = vld [vmem:[#allocation26_spill] sm:$0xff]  ;;  %v7971_v37 = vrot.slane %v10119_v31, 9  ;;  %v7956_v13 = vrot.slane %v10125_v38, 9 }
 0x49d   :  { %5823 = vxpose.xlu0.b32.start.end [1/1] (short) (narrow) %v5734_v36, 8  ;;  %v3149_v23 = vrot.slane %v3141_v17, %v8656_v61  ;;  %v3156_v34 = vrot.slane %v3142_v8, %v8656_v61  ;;  %v9379_v7 = vand.u32 127, %v10112_v10  ;;  %v10114_v36 = vld [vmem:[#allocation25_spill] sm:$0xff]  ;;  %v8355_v17 = vmov 1.0   ;;  %v10130_v8 = vld [vmem:[#allocation28_spill] sm:$0xff] }
 0x49e   :  { %v5774_v33 = vrot.slane %v5767_v51, %v8474_v18  ;;  %v7964_v22 = vrot.slane %v10114_v36, 9 }
 0x49f   :  { %5887 = vxpose.xlu1.b32.start.end [1/1] (short) (narrow) %v5750_v35, 8  ;;  %v3158_v4 = vcombine.high %v3133_v44, %v3149_v23  ;;  %v3157_v32 = vcombine.low %v3133_v44, %v3149_v23  ;;  %v7947_v35 = vrot.slane %v10116_v50, 9  ;;  %v10128_v44 = vld [vmem:[#allocation20_spill] sm:$0xff] }
 0x4a0   :  { %v7959_v23 = vrot.slane %v10128_v44, 9  ;;  %v10137_v50 = vld [vmem:[#allocation60_spill] sm:$0xff] }
 0x4a1   :  { %5855 = vxpose.xlu0.b32.start.end [1/1] (short) (narrow) %v5742_v6, 8  ;;  %v7968_v6 = vrot.slane %v10118_v21, 9  ;;  %v3835_v0 = vcombine.low %v7947_v35, %v7948_v58  ;;  %v10141_v35 = vld [vmem:[#allocation63_spill] sm:$0xff]  ;;  %v10144_v58 = vld [vmem:[#allocation44_spill] sm:$0xff] }
 0x4a2   :  { %v7949_v15 = vrot.slane %v10144_v58, 9 }
 0x4a3   :  { %5951 = vxpose.xlu1.b32.start.end [1/1] (short) (narrow) %v5766_v48, 8  ;;  %v3160_v48 = vcombine.high %v3140_v47, %v3156_v34 }
 0x4a5   :  { %5919 = vxpose.xlu0.b32.start.end [1/1] (short) (narrow) %v5758_v3, 8  ;;  %v10120_v3 = vld [vmem:[#allocation16_spill] sm:$0xff] }
 0x4a6   :  { %v7951_v51 = vrot.slane %v10120_v3, 9  ;;  %v7978_v3 = vrot.slane %v10141_v35, 9 }
 0x4a7   :  { %6015 = vxpose.xlu1.b32.start.end [1/1] (short) (narrow) %v5782_v57, 8  ;;  %v10121_v57 = vld [vmem:[#allocation18_spill] sm:$0xff] }
 0x4a9   :  { %5983 = vxpose.xlu0.b32.start.end [1/1] (short) (narrow) %v5774_v33, 8  ;;  %v7955_v33 = vrot.slane %v10121_v57, 9 }
 0x4e3   :  { %v2342_v55 = vpop.xlane.xlu1 %2341 }
 0x4e4   :  { %8280 = vrcp.f32 %v2342_v55  ;;  %v10122_v55 = vld [vmem:[#allocation57_spill] sm:$0xff] }
 0x4e5   :  { %v7960_v14 = vrot.slane %v10122_v55, 9 }
 0x4e9   :  { %v2339_v49 = vpop.xlane.xlu0 %2338 }
 0x4ea   :  { %8282 = vrcp.f32 %v2339_v49  ;;  %v10126_v49 = vld [vmem:[#allocation19_spill] sm:$0xff] }
 0x4eb   :  { %v7975_v19 = vrot.slane %v10126_v49, 9 }
 0x4ed   :  { %v2345_v60 = vpop.xlane.xlu0 %2344  ;;  %v2348_v29 = vpop.xlane.xlu1 %2347 }
 0x4ee   :  { %8284 = vrcp.f32 %v2345_v60  ;;  %v3899_v60 = vcombine.low %v7963_v9, %v7964_v22  ;;  %v3851_v9 = vcombine.low %v7951_v51, %v7952_v25  ;;  %v10142_v51 = vld [vmem:[#allocation48_spill] sm:$0xff]  ;;  %v10145_v25 = vld [vmem:[#allocation49_spill] sm:$0xff] }
 0x4ef   :  { %8286 = vrcp.f32 %v2348_v29  ;;  %v10127_v29 = vld [vmem:[#allocation45_spill] sm:$0xff]  ;;  %v7950_v57 = vrot.slane %v10142_v51, 9  ;;  %v7977_v38 = vrot.slane %v10145_v25, 9 }
 0x4f0   :  { %v3858_v5 = vrot.slane %v3851_v9, %v8656_v61 }
 0x4f1   :  { %v8281_v45 = vpop.eup %8280 }
 0x4f2   :  { %v2354_v20 = vmul.f32 %v8281_v45, %v9259_v43  ;;  %v7976_v45 = vrot.slane %v10127_v29, 9 }
 0x4f4   :  { %8183 = vmatpush3.xpose.msk.msra.mxu1 %vm1961_vm2, %v2354_v20  ;;  %v3947_v22 = vcombine.low %v7975_v19, %v7976_v45 }
 0x4f5   :  { %8192 = vmatprep.subr.mxu1 %v10111_v24 }
 0x4f6   :  { %v3954_v49 = vrot.slane %v3947_v22, %v8656_v61 }
 0x4f7   :  { %v8283_v28 = vpop.eup %8282  ;;  %8185 = vmatmul.mubr.msk.f32.vlgmr.msra.gmra.mxu1 %vm1961_vm2, %v3158_v4  ;;  %v3915_v4 = vcombine.low %v7967_v52, %v7968_v6  ;;  %v7954_v52 = vrot.slane %v10136_v16, 9  ;;  %v10139_v6 = vld [vmem:[#allocation46_spill] sm:$0xff] }
 0x4f8   :  { %v2353_v42 = vmul.f32 %v8283_v28, %v9263_v2  ;;  %8194 = vmatprep.mubr.msk.f32.mxu1 %vm8354_vm1, %v10111_v24  ;;  %v3658_v2 = vsel %vm1961_vm2, %v2354_v20, 0.0  ;;  %v10129_v28 = vld [vmem:[#allocation27_spill] sm:$0xff]  ;;  %v7973_v31 = vrot.slane %v10139_v6, 9 }
 0x4f9   :  { %v7965_v62 = vrot.slane %v10129_v28, 9  ;;  %v3922_v45 = vrot.slane %v3915_v4, %v8656_v61 }
 0x4fa   :  { %8178 = vmatpush3.xpose.msk.msra.mxu0 %vm1961_vm2, %v2353_v42  ;;  %v3657_v26 = vsel %vm1961_vm2, %v2353_v42, 0.0  ;;  %v7969_v42 = vrot.slane %v10130_v8, 9  ;;  %v3843_v8 = vcombine.low %v7949_v15, %v7950_v57 }
 0x4fb   :  { %v8285_v43 = vpop.eup %8284  ;;  %8187 = vmatprep.subr.mxu0 %v10111_v24  ;;  %v3659_v12 = vadd.f32 %v3658_v2, %v3657_v26  ;;  %v10131_v26 = vld [vmem:[#allocation42_spill] sm:$0xff]  ;;  %v10134_v2 = vld [vmem:[#allocation61_spill] sm:$0xff] }
 0x4fc   :  { %v8287_v39 = vpop.eup %8286  ;;  %v2355_v63 = vmul.f32 %v8285_v43, %v9267_v27  ;;  %v3159_v27 = vcombine.low %v3140_v47, %v3156_v34  ;;  %v7972_v43 = vrot.slane %v10131_v26, 9  ;;  %v10132_v47 = vld [vmem:[#allocation29_spill] sm:$0xff] }
 0x4fd   :  { %8180 = vmatmul.mubr.msk.f32.vlgmr.msra.gmra.mxu0 %vm1961_vm2, %v3157_v32  ;;  %v2356_v56 = vmul.f32 %v8287_v39, %v9269_v11  ;;  %v10117_v11 = vld [vmem:[#allocation8_spill] sm:$0xff]  ;;  %v7966_v34 = vrot.slane %v10132_v47, 9  ;;  %v10133_v32 = vld [vmem:[#allocation30_spill] sm:$0xff]  ;;  %v3883_v39 = vcombine.low %v7959_v23, %v7960_v14  ;;  %v3842_v23 = vrot.slane %v3835_v0, %v8656_v61 }
 0x4fe   :  { %8188 = vmatpush3.xpose.msk.msra.mxu0 %vm1961_vm2, %v2355_v63  ;;  %v3660_v59 = vsel %vm1961_vm2, %v2355_v63, 0.0  ;;  %8189 = vmatprep.mubr.msk.f32.mxu0 %vm8354_vm1, %v10111_v24  ;;  %vm461_vm3 = vcmp.eq.s32.totalorder %v10117_v11, %v9379_v7  ;;  %v7970_v10 = vrot.slane %v10133_v32, 9  ;;  %v7962_v63 = vrot.slane %v10134_v2, 9 }
 0x4ff   :  { %8193 = vmatpush3.xpose.msk.msra.mxu1 %vm1961_vm2, %v2356_v56  ;;  %8197 = vmatprep.subr.mxu0 %v10111_v24  ;;  %v3661_v30 = vadd.f32 %v3660_v59, %v3659_v12  ;;  %v3662_v46 = vsel %vm1961_vm2, %v2356_v56, 0.0  ;;  %v3867_v12 = vcombine.low %v7955_v33, %v7956_v13  ;;  %v10135_v56 = vld [vmem:[#allocation64_spill] sm:$0xff]  ;;  %v7958_v59 = vrot.slane %v10137_v50, 9  ;;  %v10143_v33 = vld [vmem:[#allocation58_spill] sm:$0xff] }
 0x500   :  { %8202 = vmatprep.subr.mxu1 %v10111_v24  ;;  %v7974_v36 = vrot.slane %v10135_v56, 9  ;;  %v3931_v21 = vcombine.low %v7971_v37, %v7972_v43  ;;  %v7957_v55 = vrot.slane %v10143_v33, 9  ;;  %v3890_v14 = vrot.slane %v3883_v39, %v8656_v61 }
 0x501   :  { %8190 = vmatmul.mubr.msk.f32.vlgmr.msra.gmra.mxu0 %vm1961_vm2, %v3159_v27  ;;  %v3663_v41 = vadd.f32 %v3662_v46, %v3661_v30  ;;  %v10138_v27 = vld [vmem:[#allocation59_spill] sm:$0xff]  ;;  %v3874_v13 = vrot.slane %v3867_v12, %v8656_v61  ;;  %v3923_v44 = vcombine.low %v7969_v42, %v7970_v10  ;;  %v3906_v32 = vrot.slane %v3899_v60, %v8656_v61 }
 0x502   :  { %8195 = vmatmul.mubr.msk.f32.vlgmr.msra.gmra.mxu1 %vm1961_vm2, %v3160_v48  ;;  %8198 = vmatpush3.msk.msra.mxu0 %vm461_vm3, %v8355_v17  ;;  %v7961_v30 = vrot.slane %v10138_v27, 9  ;;  %v10140_v48 = vld [vmem:[#allocation47_spill] sm:$0xff]  ;;  %v3939_v37 = vcombine.low %v7973_v31, %v7974_v36  ;;  %v3875_v29 = vcombine.low %v7957_v55, %v7958_v59  ;;  %v3938_v28 = vrot.slane %v3931_v21, %v8656_v61 }
 0x503   :  { %8199 = vmatprep.mubr.msk.f32.mxu0 %vm8354_vm1, %v10111_v24  ;;  %v3664_v20 = vmul.f32 0.25, %v3663_v41  ;;  %8207 = vmatprep.subr.mxu0 %v10111_v24  ;;  %v7953_v46 = vrot.slane %v10140_v48, 9  ;;  %v4420_v26 = vcombine.low %v3874_v13, %v3890_v14  ;;  %v3907_v39 = vcombine.low %v7965_v62, %v7966_v34 }
 0x504   :  { %8204 = vmatprep.mubr.msk.f32.mxu1 %vm8354_vm1, %v10111_v24  ;;  %v3891_v41 = vcombine.low %v7961_v30, %v7962_v63  ;;  %v3946_v2 = vrot.slane %v3939_v37, %v8656_v61  ;;  %v4411_v63 = vcombine.low %v3842_v23, %v3858_v5  ;;  %v4438_v9 = vcombine.low %v3938_v28, %v3954_v49 }
 0x505   :  { %8200 = vmatmul.mubr.msk.f32.vlgmr.msra.gmra.mxu0 %vm1961_vm2, %v3664_v20  ;;  %v3859_v19 = vcombine.low %v7953_v46, %v7954_v52  ;;  %v3955_v20 = vcombine.low %v7977_v38, %v7978_v3  ;;  %v3882_v42 = vrot.slane %v3875_v29, %v8656_v61  ;;  %v3930_v10 = vrot.slane %v3923_v44, %v8656_v61 }
 0x506   :  { %8209 = vmatprep.mubr.msk.f32.mxu0 %vm8354_vm1, %v10111_v24  ;;  %v3898_v43 = vrot.slane %v3891_v41, %v8656_v61  ;;  %v4429_v56 = vcombine.low %v3906_v32, %v3922_v45  ;;  %v3850_v36 = vrot.slane %v3843_v8, %v8656_v61  ;;  %v4427_v60 = vrot.slane %v4420_v26, %v8656_v61 }
 0x507   :  { %v3866_v4 = vrot.slane %v3859_v19, %v8656_v61  ;;  %v3962_v0 = vrot.slane %v3955_v20, %v8656_v61  ;;  %v3914_v22 = vrot.slane %v3907_v39, %v8656_v61  ;;  %v5227_v52 = vcombine.low %v9343_v40, %v9345_v1 }
 0x508   :  { %v4456_v62 = vcombine.low %v3882_v42, %v3898_v43  ;;  %v4418_v50 = vrot.slane %v4411_v63, %v8656_v61  ;;  %v4445_v59 = vrot.slane %v4438_v9, %v8656_v61  ;;  %v4436_v31 = vrot.slane %v4429_v56, %v8656_v61 }
 0x509   :  { %v4474_v16 = vcombine.low %v3946_v2, %v3962_v0  ;;  %v4447_v27 = vcombine.low %v3850_v36, %v3866_v4  ;;  %v5234_v1 = vrot.slane %v5227_v52, %v8474_v18 }
 0x50a   :  { %v5291_v48 = vcombine.low %v4418_v50, %v4427_v60  ;;  %v8044_v46 = vcombine.high %v4418_v50, %v4427_v60  ;;  %v4463_v35 = vrot.slane %v4456_v62, %v8656_v61  ;;  %v5292_v57 = vcombine.low %v4436_v31, %v4445_v59 }
 0x50b   :  { %v4481_v40 = vrot.slane %v4474_v16, %v8656_v61  ;;  %v8045_v33 = vcombine.high %v4436_v31, %v4445_v59  ;;  %v4454_v55 = vrot.slane %v4447_v27, %v8656_v61 }
 0x50c   :  { %v5299_v25 = vrot.slane %v5291_v48, %v8474_v18  ;;  %v5392_v38 = vrot.slane %v8044_v46, %v8474_v18  ;;  %v5306_v23 = vrot.slane %v5292_v57, %v8474_v18 }
 0x50d   :  { %v5043_v47 = vpop.trf.xlu0  ;;  %v5477_v15 = vcombine.low %v4454_v55, %v4463_v35  ;;  %v8048_v45 = vcombine.high %v4454_v55, %v4463_v35  ;;  %v5399_v20 = vrot.slane %v8045_v33, %v8474_v18 }
 0x50e   :  { %v5219_v12 = vcombine.low %v9349_v54, %v5043_v47  ;;  %v4465_v54 = vcombine.low %v3914_v22, %v3930_v10  ;;  %v5307_v32 = vcombine.low %v5299_v25, %v5306_v23 }
 0x50f   :  { %v5400_v39 = vcombine.low %v5392_v38, %v5399_v20  ;;  %v5485_v2 = vrot.slane %v5477_v15, %v8474_v18  ;;  %v5578_v16 = vrot.slane %v8048_v45, %v8474_v18 }
 0x510   :  { %v5226_v21 = vrot.slane %v5219_v12, %v8474_v18  ;;  %v4472_v41 = vrot.slane %v4465_v54, %v8656_v61 }
 0x511   :  { %v5107_v34 = vpop.trf.xlu0 }
 0x512   :  { %v5478_v13 = vcombine.low %v4472_v41, %v4481_v40  ;;  %v5252_v49 = vcombine.high %v5226_v21, %v5234_v1  ;;  %v8049_v44 = vcombine.high %v4472_v41, %v4481_v40 }
 0x513   :  { %v5203_v30 = vpop.trf.xlu1 }
 0x514   :  { %v5243_v6 = vcombine.low %v9347_v53, %v5203_v30  ;;  %v5251_v53 = vcombine.low %v5226_v21, %v5234_v1  ;;  %v5266_v4 = vrot.slane %v5252_v49, %v8656_v61  ;;  %v5492_v0 = vrot.slane %v5478_v13, %v8474_v18 }
 0x515   :  { %v5171_v3 = vpop.trf.xlu0  ;;  %v5585_v12 = vrot.slane %v8049_v44, %v8474_v18 }
 0x516   :  { %v5235_v51 = vcombine.low %v5107_v34, %v5171_v3  ;;  %v5250_v5 = vrot.slane %v5243_v6, %v8474_v18  ;;  %v5259_v8 = vrot.slane %v5251_v53, %v8656_v61  ;;  %v5493_v30 = vcombine.low %v5485_v2, %v5492_v0 }
 0x517   :  { %v5807_v14 = vpop.trf.xlu1  ;;  %v5586_v54 = vcombine.low %v5578_v16, %v5585_v12 }
 0x518   :  { %v5242_v58 = vrot.slane %v5235_v51, %v8474_v18 }
 0x519   :  { %v5839_v37 = vpop.trf.xlu0 }
 0x51a   :  { %v5267_v19 = vcombine.low %v5242_v58, %v5250_v5  ;;  %v5268_v29 = vcombine.high %v5242_v58, %v5250_v5 }
 0x51b   :  { %v5903_v28 = vpop.trf.xlu1 }
 0x51c   :  { %v5275_v26 = vrot.slane %v5267_v19, %v8656_v61  ;;  %v5282_v43 = vrot.slane %v5268_v29, %v8656_v61  ;;  %v6064_v47 = vcombine.high %v5839_v37, %v5903_v28  ;;  %v6063_v9 = vcombine.low %v5839_v37, %v5903_v28 }
 0x51d   :  { %v5871_v63 = vpop.trf.xlu0 }
 0x51e   :  { %v5283_v42 = vcombine.low %v5259_v8, %v5275_v26  ;;  %v5284_v10 = vcombine.high %v5259_v8, %v5275_v26  ;;  %v6047_v56 = vcombine.low %v5807_v14, %v5871_v63  ;;  %v6048_v36 = vcombine.high %v5807_v14, %v5871_v63 }
 0x51f   :  { %v6078_v60 = vrot.slane %v6064_v47, %v8474_v18  ;;  %v5967_v62 = vpop.trf.xlu1  ;;  %v5285_v34 = vcombine.low %v5266_v4, %v5282_v43  ;;  %v5286_v22 = vcombine.high %v5266_v4, %v5282_v43  ;;  %v6071_v59 = vrot.slane %v6063_v9, %v8474_v18 }
 0x520   :  { %8203 = vmatpush3.msra.mxu1 %v5283_v42  ;;  %8208 = vmatpush3.msra.mxu0 %v5284_v10  ;;  %v6055_v52 = vrot.slane %v6047_v56, %v8474_v18  ;;  %v6062_v50 = vrot.slane %v6048_v36, %v8474_v18 }
 0x521   :  { %8205 = vmatmul.mubr.msk.f32.vlgmr.msra.gmra.mxu1 %vm1961_vm2, %v5307_v32  ;;  %8210 = vmatmul.mubr.msk.f32.vlgmr.msra.gmra.mxu0 %vm1961_vm2, %v5400_v39  ;;  %v5935_v27 = vpop.trf.xlu0 }
 0x522   :  { %8212 = vmatprep.subr.mxu1 %v10111_v24  ;;  %8217 = vmatprep.subr.mxu0 %v10111_v24  ;;  %v6127_v21 = vcombine.low %v6062_v50, %v6078_v60  ;;  %v6128_v31 = vcombine.high %v6062_v50, %v6078_v60  ;;  %v6111_v35 = vcombine.low %v6055_v52, %v6071_v59 }
 0x523   :  { %8213 = vmatpush3.msra.mxu1 %v5285_v34  ;;  %8218 = vmatpush3.msra.mxu0 %v5286_v22  ;;  %v6031_v6 = vpop.trf.xlu1  ;;  %v6112_v57 = vcombine.high %v6055_v52, %v6071_v59 }
 0x524   :  { %8214 = vmatprep.mubr.msk.f32.mxu1 %vm8354_vm1, %v10111_v24  ;;  %8219 = vmatprep.mubr.msk.f32.mxu0 %vm8354_vm1, %v10111_v24  ;;  %v6095_v48 = vcombine.low %v5967_v62, %v6031_v6  ;;  %v6096_v46 = vcombine.high %v5967_v62, %v6031_v6  ;;  %v6119_v41 = vrot.slane %v6111_v35, %v8656_v61 }
 0x525   :  { %8215 = vmatmul.mubr.msk.f32.vlgmr.msra.gmra.mxu1 %vm1961_vm2, %v5493_v30  ;;  %8220 = vmatmul.mubr.msk.f32.vlgmr.msra.gmra.mxu0 %vm1961_vm2, %v5586_v54  ;;  %v5999_v3 = vpop.trf.xlu0  ;;  %v6135_v25 = vrot.slane %v6127_v21, %v8656_v61  ;;  %v9512_v38 = vrot.slane %v6128_v31, %v8656_v61  ;;  %v6126_v37 = vrot.slane %v6112_v57, %v8656_v61 }
 0x526   :  { %v6079_v40 = vcombine.low %v5935_v27, %v5999_v3  ;;  %v6080_v1 = vcombine.high %v5935_v27, %v5999_v3  ;;  %v6103_v51 = vrot.slane %v6095_v48, %v8474_v18  ;;  %8222 = vmatprep.subr.mxu1 %v10111_v24  ;;  %v6110_v33 = vrot.slane %v6096_v46, %v8474_v18 }
 0x527   :  { %8227 = vmatprep.subr.mxu0 %v10111_v24  ;;  %8224 = vmatprep.mubr.msk.f32.mxu1 %vm8354_vm1, %v10111_v24 }
 0x528   :  { %v6087_v55 = vrot.slane %v6079_v40, %v8474_v18  ;;  %v6094_v14 = vrot.slane %v6080_v1, %v8474_v18  ;;  %8229 = vmatprep.mubr.msk.f32.mxu0 %vm8354_vm1, %v10111_v24 }
 0x52a   :  { %v6143_v53 = vcombine.low %v6087_v55, %v6103_v51  ;;  %v6144_v5 = vcombine.high %v6087_v55, %v6103_v51  ;;  %v6159_v58 = vcombine.low %v6094_v14, %v6110_v33  ;;  %v6160_v15 = vcombine.high %v6094_v14, %v6110_v33 }
 0x52c   :  { %v6167_v13 = vrot.slane %v6159_v58, %v8656_v61  ;;  %v9517_v49 = vrot.slane %v6160_v15, %v8656_v61  ;;  %v6151_v19 = vrot.slane %v6143_v53, %v8656_v61  ;;  %v6158_v29 = vrot.slane %v6144_v5, %v8656_v61 }
 0x52e   :  { %v6176_v45 = vcombine.high %v6119_v41, %v6151_v19  ;;  %v6175_v44 = vcombine.low %v6119_v41, %v6151_v19  ;;  %v6179_v23 = vcombine.low %v6135_v25, %v6167_v13  ;;  %v6180_v20 = vcombine.high %v6135_v25, %v6167_v13 }
 0x52f   :  { %v6181_v28 = vcombine.low %v9512_v38, %v9517_v49  ;;  %v6182_v8 = vcombine.high %v9512_v38, %v9517_v49  ;;  %v6177_v26 = vcombine.low %v6126_v37, %v6158_v29  ;;  %v6178_v43 = vcombine.high %v6126_v37, %v6158_v29 }
 0x530   :  { %6215 = vxpose.xlu0.b32.start.end [1/1] (short) (narrow) %v6176_v45, 8  ;;  %6183 = vxpose.xlu1.b32.start.end [1/1] (short) (narrow) %v6175_v44, 8 }
 0x534   :  { %6247 = vxpose.xlu0.b32.start.end [1/1] (short) (narrow) %v6177_v26, 8  ;;  %6279 = vxpose.xlu1.b32.start.end [1/1] (short) (narrow) %v6178_v43, 8 }
 0x5ac   :  { %v6231_v47 = vpop.trf.xlu0  ;;  %v6199_v32 = vpop.trf.xlu1 }
 0x5b0   :  { %v6263_v39 = vpop.trf.xlu0  ;;  %v6295_v2 = vpop.trf.xlu1 }
 0x5b1   :  { %v6439_v63 = vcombine.low %v6199_v32, %v6263_v39  ;;  %v6447_v9 = vcombine.low %v6231_v47, %v6295_v2 }
 0x5b3   :  { %v9526_v4 = vrot.slane %v6439_v63, %v8474_v18  ;;  %v9529_v42 = vrot.slane %v6447_v9, %v8474_v18 }
 0x5b5   :  { %v6471_v10 = vcombine.low %v9526_v4, %v9529_v42  ;;  %v6472_v0 = vcombine.high %v9526_v4, %v9529_v42 }
 0x5b7   :  { %v3309_v12 = vpop.f32.mrf.mxu1 }
 0x5b9   :  { %v8186_v56 = vpop.f32.mrf.mxu1 }
 0x5bd   :  { %v3233_v36 = vpop.f32.mrf.mxu0 }
 0x5bf   :  { %v8181_v60 = vpop.f32.mrf.mxu0 }
 0x5c1   :  { %v3385_v62 = vpop.f32.mrf.mxu0 }
 0x5c2   :  { %v3461_v34 = vpop.f32.mrf.mxu1 }
 0x5c3   :  { %v8191_v22 = vpop.f32.mrf.mxu0 }
 0x5c4   :  { %v8196_v16 = vpop.f32.mrf.mxu1 }
 0x5c5   :  { %v3734_v52 = vpop.f32.mrf.mxu0 }
 0x5c6   :  { %3738 = vst [vmem:[#allocation4] sm:$0xff] %v3734_v52 }
 0x5c7   :  { %v8201_v50 = vpop.f32.mrf.mxu0 }
 0x5e1   :  { %v5376_v59 = vpop.f32.mrf.mxu1  ;;  %v5469_v27 = vpop.f32.mrf.mxu0 }
 0x5e2   :  { %v5662_v30 = vsel %vm1961_vm2, %v5469_v27, -inf  ;;  %v5659_v54 = vsel %vm1961_vm2, %v5376_v59, -inf }
 0x5e3   :  { %5663 = vmax.xlane.f32.xlu1 %v5662_v30  ;;  %v8211_v21 = vpop.f32.mrf.mxu0  ;;  %5660 = vmax.xlane.f32.xlu0 %v5659_v54  ;;  %v8206_v6 = vpop.f32.mrf.mxu1 }
 0x5e5   :  { %v5562_v31 = vpop.f32.mrf.mxu1  ;;  %v5655_v48 = vpop.f32.mrf.mxu0 }
 0x5e6   :  { %v5668_v46 = vsel %vm1961_vm2, %v5655_v48, -inf  ;;  %v5665_v35 = vsel %vm1961_vm2, %v5562_v31, -inf }
 0x5e7   :  { %v8221_v3 = vpop.f32.mrf.mxu0  ;;  %5669 = vmax.xlane.f32.xlu0 %v5668_v46  ;;  %5666 = vmax.xlane.f32.xlu1 %v5665_v35  ;;  %v8216_v40 = vpop.f32.mrf.mxu1 }
 0x614   :  { %6311 = vxpose.xlu0.b32.start.end [1/1] (short) (narrow) %v6179_v23, 8 }
 0x61a   :  { %6343 = vxpose.xlu1.b32.start.end [1/1] (short) (narrow) %v6180_v20, 8 }
 0x66c   :  { %v5664_v1 = vpop.xlane.xlu1 %5663  ;;  %v5661_v51 = vpop.xlane.xlu0 %5660 }
 0x66d   :  { %v5672_v57 = vsub.f32 %v5469_v27, %v5664_v1  ;;  %v5671_v33 = vsub.f32 %v5376_v59, %v5661_v51 }
 0x66f   :  { %v5677_v55 = vmul.f32 1.442695, %v5672_v57  ;;  %v5675_v14 = vmul.f32 1.442695, %v5671_v33 }
 0x670   :  { %v5670_v41 = vpop.xlane.xlu0 %5669  ;;  %v5667_v53 = vpop.xlane.xlu1 %5666 }
 0x671   :  { %8288 = vpow2.f32 %v5677_v55  ;;  %v5674_v5 = vsub.f32 %v5655_v48, %v5670_v41  ;;  %v5673_v58 = vsub.f32 %v5562_v31, %v5667_v53  ;;  %v6479_v48 = vrot.slane %v6471_v10, %v8656_v61 }
 0x672   :  { %8290 = vpow2.f32 %v5675_v14  ;;  %v6486_v10 = vrot.slane %v6472_v0, %v8656_v61 }
 0x673   :  { %v5681_v15 = vmul.f32 1.442695, %v5674_v5  ;;  %v5679_v25 = vmul.f32 1.442695, %v5673_v58 }
 0x675   :  { %8292 = vpow2.f32 %v5681_v15 }
 0x676   :  { %8294 = vpow2.f32 %v5679_v25 }
 0x67e   :  { %v8289_v37 = vpop.eup %8288 }
 0x67f   :  { %v8291_v13 = vpop.eup %8290  ;;  %v5686_v19 = vsel %vm1961_vm2, %v8289_v37, 0.0 }
 0x680   :  { %5687 = vadd.xlane.f32.xlu0 %v5686_v19  ;;  %v5683_v29 = vsel %vm1961_vm2, %v8291_v13, 0.0 }
 0x681   :  { %5684 = vadd.xlane.f32.xlu1 %v5683_v29 }
 0x682   :  { %v8293_v45 = vpop.eup %8292 }
 0x683   :  { %v8295_v44 = vpop.eup %8294  ;;  %v5692_v23 = vsel %vm1961_vm2, %v8293_v45, 0.0 }
 0x684   :  { %v5689_v20 = vsel %vm1961_vm2, %v8295_v44, 0.0 }
 0x685   :  { %5693 = vadd.xlane.f32.xlu1 %v5692_v23  ;;  %5690 = vadd.xlane.f32.xlu0 %v5689_v20 }
 0x690   :  { %v6327_v26 = vpop.trf.xlu0 }
 0x696   :  { %v6359_v43 = vpop.trf.xlu1 }
 0x6b2   :  { %6375 = vxpose.xlu0.b32.start.end [1/1] (short) (narrow) %v6181_v28, 8 }
 0x6b6   :  { %3465 = vxpose.xlu0.b32.start.end [1/1] (short) (narrow) %v3233_v36, 8 }
 0x6b8   :  { %6407 = vxpose.xlu1.b32.start.end [1/1] (short) (narrow) %v6182_v8, 8 }
 0x6ba   :  { %3529 = vxpose.xlu0.b32.start.end [1/1] (short) (narrow) %v3385_v62, 8 }
 0x6bc   :  { %3497 = vxpose.xlu1.b32.start.end [1/1] (short) (narrow) %v3309_v12, 8 }
 0x6c0   :  { %3561 = vxpose.xlu1.b32.start.end [1/1] (short) (narrow) %v3461_v34, 8 }
 0x709   :  { %v5688_v47 = vpop.xlane.xlu0 %5687 }
 0x70a   :  { %8296 = vrcp.f32 %v5688_v47  ;;  %v5685_v32 = vpop.xlane.xlu1 %5684 }
 0x70b   :  { %8298 = vrcp.f32 %v5685_v32 }
 0x70e   :  { %v5691_v38 = vpop.xlane.xlu0 %5690  ;;  %v5694_v49 = vpop.xlane.xlu1 %5693 }
 0x70f   :  { %8300 = vrcp.f32 %v5691_v38 }
 0x710   :  { %8302 = vrcp.f32 %v5694_v49 }
 0x717   :  { %v8297_v39 = vpop.eup %8296 }
 0x718   :  { %v8299_v2 = vpop.eup %8298  ;;  %v5700_v63 = vmul.f32 %v8297_v39, %v8289_v37 }
 0x719   :  { %v5699_v9 = vmul.f32 %v8299_v2, %v8291_v13 }
 0x71a   :  { %8228 = vmatpush3.xpose.msk.msra.mxu0 %vm1961_vm2, %v5700_v63  ;;  %v7004_v50 = vsel %vm1961_vm2, %v5700_v63, 0.0 }
 0x71b   :  { %8223 = vmatpush3.xpose.msk.msra.mxu1 %vm1961_vm2, %v5699_v9  ;;  %8237 = vmatprep.subr.mxu0 %v10111_v24  ;;  %v7003_v52 = vsel %vm1961_vm2, %v5699_v9, 0.0 }
 0x71c   :  { %8232 = vmatprep.subr.mxu1 %v10111_v24  ;;  %v8301_v12 = vpop.eup %8300  ;;  %v7005_v46 = vadd.f32 %v7004_v50, %v7003_v52 }
 0x71d   :  { %v5701_v62 = vmul.f32 %v8301_v12, %v8295_v44  ;;  %v8303_v27 = vpop.eup %8302 }
 0x71e   :  { %v5702_v40 = vmul.f32 %v8303_v27, %v8293_v45 }
 0x71f   :  { %v7006_v31 = vsel %vm1961_vm2, %v5701_v62, 0.0 }
 0x720   :  { %v7007_v33 = vadd.f32 %v7006_v31, %v7005_v46  ;;  %v7008_v15 = vsel %vm1961_vm2, %v5702_v40, 0.0 }
 0x722   :  { %v7009_v4 = vadd.f32 %v7008_v15, %v7007_v33 }
 0x724   :  { %v7010_v20 = vmul.f32 0.25, %v7009_v4 }
 0x72e   :  { %v6391_v28 = vpop.trf.xlu0 }
 0x72f   :  { %v6455_v56 = vcombine.low %v6327_v26, %v6391_v28 }
 0x731   :  { %v6462_v34 = vrot.slane %v6455_v56, %v8474_v18 }
 0x732   :  { %v3481_v8 = vpop.trf.xlu0 }
 0x734   :  { %v6423_v36 = vpop.trf.xlu1 }
 0x735   :  { %v6463_v60 = vcombine.low %v6359_v43, %v6423_v36 }
 0x736   :  { %v3545_v16 = vpop.trf.xlu0 }
 0x737   :  { %v6470_v22 = vrot.slane %v6463_v60, %v8474_v18  ;;  %v3593_v21 = vcombine.low %v3481_v8, %v3545_v16  ;;  %v3594_v6 = vcombine.high %v3481_v8, %v3545_v16 }
 0x738   :  { %v3513_v59 = vpop.trf.xlu1 }
 0x739   :  { %v6487_v30 = vcombine.low %v6462_v34, %v6470_v22  ;;  %v6488_v54 = vcombine.high %v6462_v34, %v6470_v22  ;;  %v3601_v55 = vrot.slane %v3593_v21, %v8474_v18  ;;  %v3608_v14 = vrot.slane %v3594_v6, %v8474_v18 }
 0x73b   :  { %v6495_v35 = vrot.slane %v6487_v30, %v8656_v61  ;;  %v6502_v1 = vrot.slane %v6488_v54, %v8656_v61 }
 0x73c   :  { %v3577_v3 = vpop.trf.xlu1 }
 0x73d   :  { %v6503_v51 = vcombine.low %v6479_v48, %v6495_v35  ;;  %v6504_v57 = vcombine.high %v6479_v48, %v6495_v35  ;;  %v3609_v41 = vcombine.low %v3513_v59, %v3577_v3  ;;  %v3610_v53 = vcombine.high %v3513_v59, %v3577_v3 }
 0x73e   :  { %v6505_v25 = vcombine.low %v6486_v10, %v6502_v1  ;;  %v6506_v37 = vcombine.high %v6486_v10, %v6502_v1 }
 0x73f   :  { %8225 = vmatmul.mubr.msk.f32.vlgmr.msra.gmra.mxu1 %vm1961_vm2, %v6503_v51  ;;  %8230 = vmatmul.mubr.msk.f32.vlgmr.msra.gmra.mxu0 %vm1961_vm2, %v6504_v57  ;;  %v3617_v5 = vrot.slane %v3609_v41, %v8474_v18  ;;  %v3624_v58 = vrot.slane %v3610_v53, %v8474_v18 }
 0x740   :  { %8233 = vmatpush3.xpose.msk.msra.mxu1 %vm1961_vm2, %v5701_v62  ;;  %8238 = vmatpush3.xpose.msk.msra.mxu0 %vm1961_vm2, %v5702_v40 }
 0x741   :  { %8234 = vmatprep.mubr.msk.f32.mxu1 %vm8354_vm1, %v10111_v24  ;;  %8239 = vmatprep.mubr.msk.f32.mxu0 %vm8354_vm1, %v10111_v24  ;;  %v3625_v42 = vcombine.low %v3601_v55, %v3617_v5  ;;  %v3626_v0 = vcombine.high %v3601_v55, %v3617_v5  ;;  %v3641_v13 = vcombine.low %v3608_v14, %v3624_v58 }
 0x742   :  { %v3642_v19 = vcombine.high %v3608_v14, %v3624_v58  ;;  %8242 = vmatprep.subr.mxu1 %v10111_v24 }
 0x743   :  { %8235 = vmatmul.mubr.msk.f32.vlgmr.msra.gmra.mxu1 %vm1961_vm2, %v6505_v25  ;;  %8240 = vmatmul.mubr.msk.f32.vlgmr.msra.gmra.mxu0 %vm1961_vm2, %v6506_v37  ;;  %v3633_v29 = vrot.slane %v3625_v42, %v8656_v61  ;;  %v3640_v45 = vrot.slane %v3626_v0, %v8656_v61  ;;  %v3649_v44 = vrot.slane %v3641_v13, %v8656_v61 }
 0x744   :  { %8243 = vmatpush3.msk.msra.mxu1 %vm461_vm3, %v8355_v17  ;;  %v3656_v23 = vrot.slane %v3642_v19, %v8656_v61  ;;  %8244 = vmatprep.mubr.msk.f32.mxu1 %vm8354_vm1, %v10111_v24 }
 0x745   :  { %v7092_v26 = vrot.slane %v3633_v29, %v8474_v18  ;;  %v7110_v43 = vcombine.high %v3633_v29, %v10111_v24  ;;  %v7141_v47 = vrot.slane %v3640_v45, %v8474_v18  ;;  %v7159_v32 = vcombine.high %v3640_v45, %v10111_v24 }
 0x746   :  { %v7190_v39 = vrot.slane %v3649_v44, %v8474_v18  ;;  %v7208_v2 = vcombine.high %v3649_v44, %v10111_v24  ;;  %v7257_v9 = vcombine.high %v3656_v23, %v10111_v24  ;;  %v7239_v12 = vrot.slane %v3656_v23, %v8474_v18 }
 0x747   :  { %8245 = vmatmul.mubr.msk.f32.vlgmr.msra.gmra.mxu1 %vm1961_vm2, %v7010_v20  ;;  %v9602_v7 = vrot.slane %v7092_v26, %v8656_v61  ;;  %v7117_v11 = vrot.slane %v7110_v43, %v8474_v18  ;;  %v9606_v17 = vrot.slane %v7141_v47, %v8656_v61  ;;  %v7166_v63 = vrot.slane %v7159_v32, %v8474_v18 }
 0x748   :  { %v7215_v8 = vrot.slane %v7208_v2, %v8474_v18  ;;  %v9626_v60 = vrot.slane %v7190_v39, %v8656_v61  ;;  %v7264_v22 = vrot.slane %v7257_v9, %v8474_v18  ;;  %v9639_v52 = vrot.slane %v7239_v12, %v8656_v61 }
 0x749   :  { %v7108_v38 = vcombine.high %v9602_v7, %v10111_v24  ;;  %v9613_v49 = vrot.slane %v7117_v11, %v8656_v61  ;;  %v9616_v28 = vrot.slane %v7166_v63, %v8656_v61  ;;  %v7157_v36 = vcombine.high %v9606_v17, %v10111_v24 }
 0x74a   :  { %v9632_v34 = vrot.slane %v7215_v8, %v8656_v61  ;;  %v7206_v16 = vcombine.high %v9626_v60, %v10111_v24  ;;  %v9645_v59 = vrot.slane %v7264_v22, %v8656_v61  ;;  %v7255_v27 = vcombine.high %v9639_v52, %v10111_v24 }
 0x74b   :  { %7290 = vrot.lane.b32.xlu0 %v7108_v38, %s8356_s8  ;;  %v7133_v56 = vcombine.high %v9613_v49, %v10111_v24  ;;  %v7182_v62 = vcombine.high %v9616_v28, %v10111_v24  ;;  %v7093_v30 = vcombine.high %v7092_v26, %v10111_v24  ;;  %v7118_v21 = vcombine.high %v7117_v11, %v10111_v24 }
 0x74c   :  { %v7231_v50 = vcombine.high %v9632_v34, %v10111_v24  ;;  %v7280_v54 = vcombine.high %v9645_v59, %v10111_v24  ;;  %v7142_v31 = vcombine.high %v7141_v47, %v10111_v24  ;;  %v7167_v46 = vcombine.high %v7166_v63, %v10111_v24 }
 0x74d   :  { %7292 = vrot.lane.b32.xlu1 %v7133_v56, %s8356_s8  ;;  %v7107_v6 = vrot.slane %v7093_v30, %v8656_v61  ;;  %v7132_v48 = vrot.slane %v7118_v21, %v8656_v61  ;;  %v7191_v3 = vcombine.high %v7190_v39, %v10111_v24  ;;  %v7216_v1 = vcombine.high %v7215_v8, %v10111_v24 }
 0x74e   :  { %v7156_v35 = vrot.slane %v7142_v31, %v8656_v61  ;;  %v7181_v40 = vrot.slane %v7167_v46, %v8656_v61  ;;  %v7240_v57 = vcombine.high %v7239_v12, %v10111_v24  ;;  %v7265_v55 = vcombine.high %v7264_v22, %v10111_v24 }
 0x74f   :  { %7294 = vrot.lane.b32.xlu0 %v7157_v36, %s8356_s8  ;;  %v7205_v51 = vrot.slane %v7191_v3, %v8656_v61  ;;  %v7230_v33 = vrot.slane %v7216_v1, %v8656_v61  ;;  %v7109_v53 = vcombine.high %v7107_v6, %v10111_v24  ;;  %v7134_v10 = vcombine.high %v7132_v48, %v10111_v24 }
 0x750   :  { %v9675_v14 = vrot.slane %v7240_v57, %v8656_v61  ;;  %v9679_v41 = vrot.slane %v7265_v55, %v8656_v61  ;;  %v7158_v5 = vcombine.high %v7156_v35, %v10111_v24  ;;  %v7183_v58 = vcombine.high %v7181_v40, %v10111_v24 }
 0x751   :  { %7296 = vrot.lane.b32.xlu1 %v7182_v62, %s8356_s8  ;;  %v7207_v15 = vcombine.high %v7205_v51, %v10111_v24  ;;  %v7232_v25 = vcombine.high %v7230_v33, %v10111_v24 }
 0x753   :  { %7298 = vrot.lane.b32.xlu0 %v7206_v16, %s8356_s8 }
 0x755   :  { %7300 = vrot.lane.b32.xlu1 %v7231_v50, %s8356_s8 }
 0x757   :  { %7302 = vrot.lane.b32.xlu0 %v7255_v27, %s8356_s8 }
 0x759   :  { %7304 = vrot.lane.b32.xlu1 %v7280_v54, %s8356_s8 }
 0x75b   :  { %7322 = vrot.lane.b32.xlu0 %v7107_v6, %s8357_s22 }
 0x75d   :  { %7324 = vrot.lane.b32.xlu1 %v7132_v48, %s8357_s22 }
 0x75f   :  { %7326 = vrot.lane.b32.xlu0 %v7156_v35, %s8357_s22 }
 0x761   :  { %7328 = vrot.lane.b32.xlu1 %v7181_v40, %s8357_s22 }
 0x763   :  { %7330 = vrot.lane.b32.xlu0 %v7205_v51, %s8357_s22 }
 0x765   :  { %7332 = vrot.lane.b32.xlu1 %v7230_v33, %s8357_s22 }
 0x767   :  { %7334 = vrot.lane.b32.xlu0 %v9675_v14, %s8357_s22 }
 0x769   :  { %7336 = vrot.lane.b32.xlu1 %v9679_v41, %s8357_s22 }
 0x76b   :  { %7354 = vrot.lane.b32.xlu0 %v7109_v53, %s8358_s5 }
 0x76d   :  { %7356 = vrot.lane.b32.xlu1 %v7134_v10, %s8358_s5 }
 0x76f   :  { %7358 = vrot.lane.b32.xlu0 %v7158_v5, %s8358_s5 }
 0x771   :  { %7360 = vrot.lane.b32.xlu1 %v7183_v58, %s8358_s5 }
 0x773   :  { %7362 = vrot.lane.b32.xlu0 %v7207_v15, %s8358_s5 }
 0x775   :  { %7364 = vrot.lane.b32.xlu1 %v7232_v25, %s8358_s5 }
 0x7bd   :  { %v7291_v37 = vpop.permute.xlu0 %7290 }
 0x7be   :  { %v7378_v44 = vsel %vm1961_vm2, %v9602_v7, %v7291_v37 }
 0x7bf   :  { %v7293_v4 = vpop.permute.xlu1 %7292 }
 0x7c0   :  { %v7379_v26 = vsel %vm1961_vm2, %v9613_v49, %v7293_v4 }
 0x7c1   :  { %v7295_v42 = vpop.permute.xlu0 %7294 }
 0x7c2   :  { %v7380_v32 = vsel %vm1961_vm2, %v9606_v17, %v7295_v42 }
 0x7c3   :  { %v7297_v0 = vpop.permute.xlu1 %7296 }
 0x7c4   :  { %v7381_v11 = vsel %vm1961_vm2, %v9616_v28, %v7297_v0 }
 0x7c5   :  { %v7299_v13 = vpop.permute.xlu0 %7298 }
 0x7c6   :  { %v7382_v9 = vsel %vm1961_vm2, %v9626_v60, %v7299_v13 }
 0x7c7   :  { %v7301_v19 = vpop.permute.xlu1 %7300 }
 0x7c8   :  { %v7383_v8 = vsel %vm1961_vm2, %v9632_v34, %v7301_v19 }
 0x7c9   :  { %v7303_v29 = vpop.permute.xlu0 %7302 }
 0x7ca   :  { %v7384_v28 = vsel %vm1961_vm2, %v9639_v52, %v7303_v29 }
 0x7cb   :  { %v7305_v45 = vpop.permute.xlu1 %7304 }
 0x7cc   :  { %v7385_v60 = vsel %vm1961_vm2, %v9645_v59, %v7305_v45 }
 0x7cd   :  { %v7323_v23 = vpop.permute.xlu0 %7322 }
 0x7ce   :  { %v7387_v20 = vsel %vm7386_vm4, %v7378_v44, %v7323_v23 }
 0x7cf   :  { %v7325_v43 = vpop.permute.xlu1 %7324 }
 0x7d0   :  { %v7388_v47 = vsel %vm7386_vm4, %v7379_v26, %v7325_v43 }
 0x7d1   :  { %v7327_v39 = vpop.permute.xlu0 %7326 }
 0x7d2   :  { %v7389_v2 = vsel %vm7386_vm4, %v7380_v32, %v7327_v39 }
 0x7d3   :  { %v7329_v63 = vpop.permute.xlu1 %7328 }
 0x7d4   :  { %v7390_v7 = vsel %vm7386_vm4, %v7381_v11, %v7329_v63 }
 0x7d5   :  { %v7331_v38 = vpop.permute.xlu0 %7330 }
 0x7d6   :  { %v9712_v49 = vsel %vm7386_vm4, %v7382_v9, %v7331_v38 }
 0x7d7   :  { %v7333_v17 = vpop.permute.xlu1 %7332 }
 0x7d8   :  { %v9717_v12 = vsel %vm7386_vm4, %v7383_v8, %v7333_v17 }
 0x7d9   :  { %v7335_v56 = vpop.permute.xlu0 %7334 }
 0x7da   :  { %v9722_v36 = vsel %vm7386_vm4, %v7384_v28, %v7335_v56 }
 0x7db   :  { %v7337_v62 = vpop.permute.xlu1 %7336 }
 0x7dc   :  { %v9727_v22 = vsel %vm7386_vm4, %v7385_v60, %v7337_v62 }
 0x7dd   :  { %v7355_v34 = vpop.permute.xlu0 %7354 }
 0x7de   :  { %v9730_v16 = vsel %vm7395_vm5, %v7387_v20, %v7355_v34 }
 0x7df   :  { %v7357_v50 = vpop.permute.xlu1 %7356 }
 0x7e0   :  { %v9733_v27 = vsel %vm7395_vm5, %v7388_v47, %v7357_v50 }
 0x7e1   :  { %v7359_v52 = vpop.permute.xlu0 %7358 }
 0x7e2   :  { %v9736_v30 = vsel %vm7395_vm5, %v7389_v2, %v7359_v52 }
 0x7e3   :  { %v7361_v54 = vpop.permute.xlu1 %7360 }
 0x7e4   :  { %v9739_v59 = vsel %vm7395_vm5, %v7390_v7, %v7361_v54 }
 0x7e5   :  { %v9741_v57 = vpop.permute.xlu0 %7362 }
 0x7e7   :  { %v9743_v33 = vpop.permute.xlu1 %7364 }
 0x7ff   :  { %v6579_v21 = vpop.f32.mrf.mxu1  ;;  %v6655_v6 = vpop.f32.mrf.mxu0 }
 0x800   :  { %6843 = vxpose.xlu1.b32.start.end [1/1] (short) (narrow) %v6655_v6, 8  ;;  %6811 = vxpose.xlu0.b32.start.end [1/1] (short) (narrow) %v6579_v21, 8 }
 0x801   :  { %v8226_v31 = vpop.f32.mrf.mxu1  ;;  %v8231_v48 = vpop.f32.mrf.mxu0 }
 0x803   :  { %v6731_v46 = vpop.f32.mrf.mxu1  ;;  %v6807_v35 = vpop.f32.mrf.mxu0 }
 0x804   :  { %6907 = vxpose.xlu1.b32.start.end [1/1] (short) (narrow) %v6807_v35, 8  ;;  %6875 = vxpose.xlu0.b32.start.end [1/1] (short) (narrow) %v6731_v46, 8 }
 0x805   :  { %v8236_v3 = vpop.f32.mrf.mxu1  ;;  %v8241_v40 = vpop.f32.mrf.mxu0 }
 0x807   :  { %v7080_v1 = vpop.f32.mrf.mxu1 }
 0x808   :  { %7085 = vst [vmem:[#allocation4 + $0x8] sm:$0xff] %v7080_v1 }
 0x809   :  { %v8246_v51 = vpop.f32.mrf.mxu1 }
 0x87c   :  { %v6859_v55 = vpop.trf.xlu1  ;;  %v6827_v53 = vpop.trf.xlu0 }
 0x880   :  { %v6923_v10 = vpop.trf.xlu1  ;;  %v6891_v5 = vpop.trf.xlu0 }
 0x881   :  { %v6955_v58 = vcombine.low %v6859_v55, %v6923_v10  ;;  %v6956_v15 = vcombine.high %v6859_v55, %v6923_v10  ;;  %v6939_v25 = vcombine.low %v6827_v53, %v6891_v5  ;;  %v6940_v37 = vcombine.high %v6827_v53, %v6891_v5 }
 0x883   :  { %v6963_v4 = vrot.slane %v6955_v58, %v8474_v18  ;;  %v6970_v42 = vrot.slane %v6956_v15, %v8474_v18  ;;  %v6947_v0 = vrot.slane %v6939_v25, %v8474_v18  ;;  %v6954_v13 = vrot.slane %v6940_v37, %v8474_v18 }
 0x885   :  { %v6971_v19 = vcombine.low %v6947_v0, %v6963_v4  ;;  %v6972_v29 = vcombine.high %v6947_v0, %v6963_v4  ;;  %v6987_v45 = vcombine.low %v6954_v13, %v6970_v42  ;;  %v6988_v44 = vcombine.high %v6954_v13, %v6970_v42 }
 0x887   :  { %v6979_v23 = vrot.slane %v6971_v19, %v8656_v61  ;;  %v6986_v20 = vrot.slane %v6972_v29, %v8656_v61  ;;  %v6995_v26 = vrot.slane %v6987_v45, %v8656_v61  ;;  %v7002_v43 = vrot.slane %v6988_v44, %v8656_v61 }
 0x889   :  { %v7410_v47 = vrot.slane %v6979_v23, %v8474_v18  ;;  %v7428_v32 = vcombine.high %v6979_v23, %v10111_v24  ;;  %v7459_v39 = vrot.slane %v6986_v20, %v8474_v18  ;;  %v7477_v2 = vcombine.high %v6986_v20, %v10111_v24 }
 0x88a   :  { %v7508_v11 = vrot.slane %v6995_v26, %v8474_v18  ;;  %v7526_v38 = vcombine.high %v6995_v26, %v10111_v24  ;;  %v7557_v8 = vrot.slane %v7002_v43, %v8474_v18  ;;  %v7575_v34 = vcombine.high %v7002_v43, %v10111_v24 }
 0x88b   :  { %v9759_v63 = vrot.slane %v7459_v39, %v8656_v61  ;;  %v9762_v7 = vrot.slane %v7410_v47, %v8656_v61  ;;  %v7435_v9 = vrot.slane %v7428_v32, %v8474_v18  ;;  %v7484_v17 = vrot.slane %v7477_v2, %v8474_v18  ;;  %v7755_v2 = vld [vmem:[%s9951_s9 + $0x10] sm:$0xff] }
 0x88c   :  { %v9776_v62 = vrot.slane %v7508_v11, %v8656_v61  ;;  %v9782_v50 = vrot.slane %v7557_v8, %v8656_v61  ;;  %v7533_v6 = vrot.slane %v7526_v38, %v8474_v18  ;;  %v7411_v31 = vcombine.high %v7410_v47, %v10111_v24 }
 0x88d   :  { %v7475_v28 = vcombine.high %v9759_v63, %v10111_v24  ;;  %v7426_v56 = vcombine.high %v9762_v7, %v10111_v24  ;;  %v9773_v60 = vrot.slane %v7435_v9, %v8656_v61  ;;  %v9789_v21 = vrot.slane %v7484_v17, %v8656_v61 }
 0x88e   :  { %v7524_v54 = vcombine.high %v9776_v62, %v10111_v24  ;;  %v7573_v46 = vcombine.high %v9782_v50, %v10111_v24  ;;  %v9800_v35 = vrot.slane %v7533_v6, %v8656_v61  ;;  %v7582_v3 = vrot.slane %v7575_v34, %v8474_v18 }
 0x88f   :  { %7612 = vrot.lane.b32.xlu1 %v7475_v28, %s8356_s8  ;;  %7608 = vrot.lane.b32.xlu0 %v7426_v56, %s8356_s8  ;;  %v7451_v52 = vcombine.high %v9773_v60, %v10111_v24  ;;  %v7500_v48 = vcombine.high %v9789_v21, %v10111_v24  ;;  %v7425_v1 = vrot.slane %v7411_v31, %v8656_v61 }
 0x890   :  { %v7549_v40 = vcombine.high %v9800_v35, %v10111_v24  ;;  %v9809_v51 = vrot.slane %v7582_v3, %v8656_v61  ;;  %v7460_v55 = vcombine.high %v7459_v39, %v10111_v24  ;;  %v7436_v5 = vcombine.high %v7435_v9, %v10111_v24  ;;  %v7756_v39 = vld [vmem:[%s9951_s9 + $0x18] sm:$0xff]  ;;  %v7753_v9 = vld [vmem:[%s9951_s9] sm:$0xff] }
 0x891   :  { %v7509_v58 = vcombine.high %v7508_v11, %v10111_v24  ;;  %v7485_v37 = vcombine.high %v7484_v17, %v10111_v24  ;;  %v7558_v4 = vcombine.high %v7557_v8, %v10111_v24  ;;  %v7534_v13 = vcombine.high %v7533_v6, %v10111_v24  ;;  %8247 = vmatprep.subr.mxu0 %v7756_v39 }
 0x892   :  { %v7598_v53 = vcombine.high %v9809_v51, %v10111_v24  ;;  %v7474_v10 = vrot.slane %v7460_v55, %v8656_v61  ;;  %v7450_v15 = vrot.slane %v7436_v5, %v8656_v61  ;;  %v7427_v29 = vcombine.high %v7425_v1, %v10111_v24  ;;  %8248 = vmatpush3.msra.mxu0 %v7756_v39 }
 0x893   :  { %7610 = vrot.lane.b32.xlu1 %v7451_v52, %s8356_s8  ;;  %7616 = vrot.lane.b32.xlu0 %v7524_v54, %s8356_s8  ;;  %v7523_v25 = vrot.slane %v7509_v58, %v8656_v61  ;;  %v7499_v42 = vrot.slane %v7485_v37, %v8656_v61  ;;  %v7572_v0 = vrot.slane %v7558_v4, %v8656_v61 }
 0x894   :  { %v7548_v19 = vrot.slane %v7534_v13, %v8656_v61  ;;  %v7583_v45 = vcombine.high %v7582_v3, %v10111_v24  ;;  %v7476_v23 = vcombine.high %v7474_v10, %v10111_v24  ;;  %v7452_v20 = vcombine.high %v7450_v15, %v10111_v24  ;;  %8249 = vmatprep.subr.mxu0 %v7755_v2 }
 0x895   :  { %v7525_v26 = vcombine.high %v7523_v25, %v10111_v24  ;;  %v7501_v43 = vcombine.high %v7499_v42, %v10111_v24  ;;  %v7574_v47 = vcombine.high %v7572_v0, %v10111_v24  ;;  %v7256_v32 = vcombine.high %v9675_v14, %v10111_v24  ;;  %v7754_v14 = vld [vmem:[%s9951_s9 + $0x8] sm:$0xff]  ;;  %8250 = vmatpush3.msra.mxu0 %v7755_v2  ;;  %s8359_s9 = smov [#allocation4]  }
 0x896   :  { %v7597_v44 = vrot.slane %v7583_v45, %v8656_v61  ;;  %v7550_v61 = vcombine.high %v7548_v19, %v10111_v24  ;;  %v7281_v38 = vcombine.high %v9679_v41, %v10111_v24  ;;  %8251 = vmatprep.subr.mxu0 %v7754_v14  ;;  %s7904_s6 = sshll.u32 %s8359_s9, 4  ;;  %s7905_s6 = int_to_ptr.vmem [resolvable:$true] %s7904_s6 }
 0x897   :  { %7614 = vrot.lane.b32.xlu1 %v7500_v48, %s8356_s8  ;;  %7620 = vrot.lane.b32.xlu0 %v7573_v46, %s8356_s8  ;;  %s8304_s4 = scalar_lea.vmem %s7905_s6, 256  ;;  %p8309_p1 = scmp.lt.s32.totalorder %s7905_s6, %s7905_s6 }
 0x898   :  { %v7599_v11 = vcombine.high %v7597_v44, %v10111_v24  ;;  %8252 = vmatpush3.msra.mxu0 %v7754_v14  ;;  %p8305_p0 = scmp.ne.s32.totalorder %s7905_s6, %s8304_s4  ;;  %p8310_p2 = scmp.lt.s32.totalorder %s8304_s4, %s8304_s4 }
 0x899   :  { %8253 = vmatprep.subr.mxu0 %v7753_v9 }
 0x89a   :  { %8254 = vmatpush3.msra.mxu0 %v7753_v9  ;;  %p8311_p3 = por %p8310_p2, %p8309_p1 }
 0x89b   :  { %7618 = vrot.lane.b32.xlu1 %v7549_v40, %s8356_s8  ;;  %7640 = vrot.lane.b32.xlu0 %v7425_v1, %s8357_s22 }
 0x89c   :  { %p8312_p4 = pnand %p8311_p3, %p8305_p0 }
 0x89f   :  { %7622 = vrot.lane.b32.xlu1 %v7598_v53, %s8356_s8  ;;  %7644 = vrot.lane.b32.xlu0 %v7474_v10, %s8357_s22 }
 0x8a3   :  { %7642 = vrot.lane.b32.xlu1 %v7450_v15, %s8357_s22  ;;  %7648 = vrot.lane.b32.xlu0 %v7523_v25, %s8357_s22 }
 0x8a7   :  { %7646 = vrot.lane.b32.xlu1 %v7499_v42, %s8357_s22  ;;  %7652 = vrot.lane.b32.xlu0 %v7572_v0, %s8357_s22 }
 0x8ab   :  { %7650 = vrot.lane.b32.xlu1 %v7548_v19, %s8357_s22  ;;  %7672 = vrot.lane.b32.xlu0 %v7427_v29, %s8358_s5 }
 0x8af   :  { %7654 = vrot.lane.b32.xlu1 %v7597_v44, %s8357_s22  ;;  %7676 = vrot.lane.b32.xlu0 %v7476_v23, %s8358_s5 }
 0x8b3   :  { %7674 = vrot.lane.b32.xlu1 %v7452_v20, %s8358_s5  ;;  %7680 = vrot.lane.b32.xlu0 %v7525_v26, %s8358_s5 }
 0x8b7   :  { %7678 = vrot.lane.b32.xlu1 %v7501_v43, %s8358_s5  ;;  %7684 = vrot.lane.b32.xlu0 %v7574_v47, %s8358_s5 }
 0x8bb   :  { %7682 = vrot.lane.b32.xlu1 %v7550_v61, %s8358_s5  ;;  %7366 = vrot.lane.b32.xlu0 %v7256_v32, %s8358_s5 }
 0x8bf   :  { %7686 = vrot.lane.b32.xlu1 %v7599_v11, %s8358_s5 }
 0x8c3   :  { %7368 = vrot.lane.b32.xlu1 %v7281_v38, %s8358_s5 }
 0x901   :  { %v7613_v8 = vpop.permute.xlu1 %7612  ;;  %v7609_v17 = vpop.permute.xlu0 %7608 }
 0x902   :  { %v7696_v55 = vsel %vm1961_vm2, %v9762_v7, %v7609_v17  ;;  %v7698_v15 = vsel %vm1961_vm2, %v9759_v63, %v7613_v8  ;;  %v7400_v8 = vsel %vm7395_vm5, %v9712_v49, %v9741_v57 }
 0x905   :  { %v7611_v28 = vpop.permute.xlu1 %7610  ;;  %v7617_v56 = vpop.permute.xlu0 %7616 }
 0x906   :  { %v7697_v25 = vsel %vm1961_vm2, %v9773_v60, %v7611_v28  ;;  %v7700_v29 = vsel %vm1961_vm2, %v9776_v62, %v7617_v56 }
 0x909   :  { %v7615_v34 = vpop.permute.xlu1 %7614  ;;  %v7621_v52 = vpop.permute.xlu0 %7620 }
 0x90a   :  { %v7699_v63 = vsel %vm1961_vm2, %v9789_v21, %v7615_v34 }
 0x90d   :  { %v7619_v54 = vpop.permute.xlu1 %7618  ;;  %v7641_v6 = vpop.permute.xlu0 %7640 }
 0x90e   :  { %v7704_v53 = vsel %vm7386_vm4, %v7696_v55, %v7641_v6  ;;  %v7701_v21 = vsel %vm1961_vm2, %v9800_v35, %v7619_v54  ;;  %v7401_v35 = vsel %vm7395_vm5, %v9717_v12, %v9743_v33 }
 0x911   :  { %v7623_v31 = vpop.permute.xlu1 %7622  ;;  %v7645_v48 = vpop.permute.xlu0 %7644 }
 0x912   :  { %v7706_v37 = vsel %vm7386_vm4, %v7698_v15, %v7645_v48  ;;  %v7703_v28 = vsel %vm1961_vm2, %v9809_v51, %v7623_v31 }
 0x915   :  { %v7643_v46 = vpop.permute.xlu1 %7642  ;;  %v7649_v3 = vpop.permute.xlu0 %7648 }
 0x916   :  { %v7705_v4 = vsel %vm7386_vm4, %v7697_v25, %v7643_v46  ;;  %v7708_v60 = vsel %vm7386_vm4, %v7700_v29, %v7649_v3 }
 0x919   :  { %v7647_v40 = vpop.permute.xlu1 %7646  ;;  %v7653_v24 = vpop.permute.xlu0 %7652 }
 0x91a   :  { %v7707_v44 = vsel %vm7386_vm4, %v7699_v63, %v7647_v40 }
 0x91d   :  { %v7651_v41 = vpop.permute.xlu1 %7650  ;;  %v7673_v1 = vpop.permute.xlu0 %7672 }
 0x91e   :  { %v7712_v58 = vsel %vm7395_vm5, %v7704_v53, %v7673_v1  ;;  %v7709_v2 = vsel %vm7386_vm4, %v7701_v21, %v7651_v41 }
 0x91f   :  { %v7728_v42 = vrot.slane %v7712_v58, 7 }
 0x921   :  { %v7655_v10 = vpop.permute.xlu1 %7654  ;;  %v7677_v5 = vpop.permute.xlu0 %7676  ;;  %v7745_v23 = vsel %vm7744_vm6, %v9730_v16, %v7728_v42 }
 0x922   :  { %v7714_v7 = vsel %vm7395_vm5, %v7706_v37, %v7677_v5  ;;  %v7711_v54 = vsel %vm7386_vm4, %v7703_v28, %v7655_v10 }
 0x923   :  { %v7730_v20 = vrot.slane %v7714_v7, 7 }
 0x925   :  { %v7675_v0 = vpop.permute.xlu1 %7674  ;;  %v7681_v13 = vpop.permute.xlu0 %7680  ;;  %v7747_v16 = vsel %vm7744_vm6, %v9736_v30, %v7730_v20  ;;  %v7702_v30 = vsel %vm1961_vm2, %v9782_v50, %v7621_v52 }
 0x926   :  { %v7713_v19 = vsel %vm7395_vm5, %v7705_v4, %v7675_v0  ;;  %v7716_v61 = vsel %vm7395_vm5, %v7708_v60, %v7681_v13  ;;  %v7710_v34 = vsel %vm7386_vm4, %v7702_v30, %v7653_v24 }
 0x927   :  { %v7729_v45 = vrot.slane %v7713_v19, 7  ;;  %v7732_v11 = vrot.slane %v7716_v61, 7 }
 0x929   :  { %v7746_v26 = vsel %vm7744_vm6, %v9733_v27, %v7729_v45  ;;  %v7679_v43 = vpop.permute.xlu1 %7678  ;;  %v7685_v39 = vpop.permute.xlu0 %7684  ;;  %v7749_v49 = vsel %vm7744_vm6, %v7400_v8, %v7732_v11 }
 0x92a   :  { %v7772_v47 = vcombine.low %v7745_v23, %v7746_v26  ;;  %v7715_v62 = vsel %vm7395_vm5, %v7707_v44, %v7679_v43  ;;  %v7718_v6 = vsel %vm7395_vm5, %v7710_v34, %v7685_v39 }
 0x92b   :  { %v7731_v32 = vrot.slane %v7715_v62, 7  ;;  %v7734_v48 = vrot.slane %v7718_v6, 7 }
 0x92d   :  { %v7748_v27 = vsel %vm7744_vm6, %v9739_v59, %v7731_v32  ;;  %v7683_v14 = vpop.permute.xlu1 %7682  ;;  %v7780_v59 = vrot.slane %v7772_v47, %v8474_v18  ;;  %v7367_v12 = vpop.permute.xlu0 %7366 }
 0x92e   :  { %v7773_v9 = vcombine.low %v7747_v16, %v7748_v27  ;;  %v7717_v38 = vsel %vm7395_vm5, %v7709_v2, %v7683_v14  ;;  %v7402_v31 = vsel %vm7395_vm5, %v9722_v36, %v7367_v12 }
 0x92f   :  { %v7733_v17 = vrot.slane %v7717_v38, 7  ;;  %v7751_v24 = vsel %vm7744_vm6, %v7402_v31, %v7734_v48 }
 0x930   :  { %v7787_v56 = vrot.slane %v7773_v9, %v8474_v18 }
 0x931   :  { %v7750_v57 = vsel %vm7744_vm6, %v7401_v35, %v7733_v17  ;;  %v7687_v33 = vpop.permute.xlu1 %7686 }
 0x932   :  { %v7789_v50 = vcombine.low %v7749_v49, %v7750_v57  ;;  %v7719_v52 = vsel %vm7395_vm5, %v7711_v54, %v7687_v33  ;;  %v7788_v51 = vcombine.low %v7780_v59, %v7787_v56 }
 0x933   :  { %v7735_v46 = vrot.slane %v7719_v52, 7 }
 0x934   :  { %8255 = vmatprep.mubr.msk.f32.mxu0 %vm55_vm0, %v7788_v51  ;;  %v7797_v55 = vrot.slane %v7789_v50, %v8474_v18 }
 0x935   :  { %v7369_v3 = vpop.permute.xlu1 %7368 }
 0x936   :  { %v7403_v40 = vsel %vm7395_vm5, %v9727_v22, %v7369_v3 }
 0x937   :  { %v7752_v41 = vsel %vm7744_vm6, %v7403_v40, %v7735_v46 }
 0x938   :  { %v7790_v1 = vcombine.low %v7751_v24, %v7752_v41 }
 0x93a   :  { %v7804_v53 = vrot.slane %v7790_v1, %v8474_v18 }
 0x93c   :  { %v7805_v10 = vcombine.low %v7797_v55, %v7804_v53 }
 0x93e   :  { %8256 = vmatmul.mubr.msk.f32.vlgmr.msra.gmra.mxu0 %vm55_vm0, %v7805_v10 }
 0x93f   :  { %8315 = shalt.err (!%p8312_p4)
}
 0x940   :  { %s8360_s28 = smov 128   ;;  %v8061_v18 = vld [vmem:[%s9952_s10] ss:$0 sm:$0xff]  ;;  %s8361_s15 = smov [#allocation2]  }
 0x941   :  { %7910 = dma.vmem_to_hbm [thread:$0]  %s7905_s6, 256, %s9954_s12, [#allocation5], %s8360_s28, %s8360_s28, %s8356_s8  }
 0x942   :  { %s7892_s16 = sshll.u32 %s8361_s15, 4  ;;  %s7893_s16 = int_to_ptr.vmem [resolvable:$true] %s7892_s16 }
 0x943   :  { %s8324_s17 = scalar_lea.vmem %s7893_s16, 256  ;;  %p8329_p6 = scmp.lt.s32.totalorder %s7893_s16, %s7893_s16 }
 0x944   :  { %p8325_p5 = scmp.ne.s32.totalorder %s7893_s16, %s8324_s17  ;;  %p8330_p7 = scmp.lt.s32.totalorder %s8324_s17, %s8324_s17 }
 0x946   :  { %p8331_p8 = por %p8330_p7, %p8329_p6 }
 0x948   :  { %p8332_p9 = pnand %p8331_p8, %p8325_p5 }
 0x9fe   :  { %v8257_v36 = vpop.f32.mrf.mxu0 }
 0x9ff   :  { %v7882_v22 = vadd.f32 %v8257_v36, %v8061_v18 }
 0xa00   :  { %v7876_v5 = vpop.f32.mrf.mxu0 }
 0xa01   :  { %7886 = vst [vmem:[#allocation2 + $0x8] sm:$0xff] %v7882_v22  ;;  %v7877_v58 = vadd.f32 %v8061_v18, %v7876_v5 }
 0xa03   :  { %7885 = vst [vmem:[#allocation2] sm:$0xff] %v7877_v58 }
 0xa04   :  { %8335 = shalt.err (!%p8332_p9)
}
 0xa05   :  { %7898 = dma.vmem_to_hbm [thread:$0]  %s7893_s16, 256, %s9953_s11, [#allocation3], %s8360_s28, %s8360_s28, %s8356_s8  }
 0xa06   :  { %8344 = dma.done.wait [#allocation3], 256  }
 0xa07   :  { %8345 = vsyncadd [#allocation3], 4294967040 }
 0xa08   :  { %8346 = dma.done.wait [#allocation5], 256  }
 0xa09   :  { %8347 = vsyncadd [#allocation5], 4294967040 }
 0xa0a   :  { %7917 = vsyncpa [#allocation3], 1 }
 0xa0b   :  { %7918 = vsyncpa [#allocation5], 1 }

</bundles_post_ra>
